<compile_context>
chip_gen: v5e
topology: v5e:2x2
jax: 0.10.0
libtpu: 0.0.40
codegen_flags: <defaults>
</compile_context>

<pallas_src>
import functools
import math

import jax
import jax.numpy as jnp
from jax.experimental import pallas as pl
from jax.experimental.pallas import tpu as pltpu

# ----------------------------------------------------------------------------
# Toy-sized config (mirrors the ModelArgs fields that matter for the forward)
# ----------------------------------------------------------------------------
HIDDEN = 32
NUM_HEADS = 4
NUM_KV_HEADS = 4                 # == NUM_HEADS -> repeat() in the torch code is identity
INTERMEDIATE = 64
HEAD_DIM = HIDDEN // NUM_HEADS   # 8
HALF = HEAD_DIM // 2             # 4
RMS_EPS = 1e-6
ROPE_BASE = 100000.0             # args.rope_theta
ROPE_LINEAR_SCALE = 4.0          # args.rope_scaling_factor

BATCH = 2
SEQ = 8


# ----------------------------------------------------------------------------
# Pallas kernel
# ----------------------------------------------------------------------------
def _rms_norm(x, eps):
    # Gain vector is folded into the downstream weight matrices.
    var = jnp.mean(x * x, axis=-1, keepdims=True)
    return x * jax.lax.rsqrt(var + eps)


def decoder_layer_kernel(x_ref, cos_ref, sin_ref, *rest,
                         num_heads, head_dim, hidden, inter, eps, causal):
    if causal:
        (wqkv_ref, wo_ref, wgu_ref, wd_ref,
         out_ref, kc_ref, vc_ref, q_sc, k_sc, v_sc) = rest
        mask_ref = None
    else:
        (mask_ref, wqkv_ref, wo_ref, wgu_ref, wd_ref,
         out_ref, kc_ref, vc_ref, q_sc, k_sc, v_sc) = rest

    H = hidden
    I = inter
    L = x_ref.shape[1]
    x = x_ref[0]                 # (L, H) f32
    cos = cos_ref[...]           # (L, H)  per-head [cos, cos]
    sin = sin_ref[...]           # (L, H)  per-head [-sin, sin]

    # ---------------- self attention ----------------
    h1 = _rms_norm(x, eps)       # ln1 gain folded into w_qkv rows

    # One fused MXU matmul: [q*scale | rot(q)*scale | k | rot(k) | v] -> (L, 5H)
    qkv = jnp.dot(h1.astype(jnp.bfloat16), wqkv_ref[...],
                  preferred_element_type=jnp.float32)
    q, q_r = qkv[:, 0 * H:1 * H], qkv[:, 1 * H:2 * H]
    k, k_r = qkv[:, 2 * H:3 * H], qkv[:, 3 * H:4 * H]
    v = qkv[:, 4 * H:5 * H]

    # RoPE (linear scaling): pure elementwise, rotate-half folded into weights.
    rq = (q * cos + q_r * sin).astype(jnp.bfloat16)
    rk = (k * cos + k_r * sin).astype(jnp.bfloat16)
    vb = v.astype(jnp.bfloat16)

    # Split heads into bf16 (NH, L, hd) VMEM scratch (no lane concatenation).
    for h in range(num_heads):
        sl = slice(h * head_dim, (h + 1) * head_dim)
        q_sc[h] = rq[:, sl]
        k_sc[h] = rk[:, sl]
        v_sc[h] = vb[:, sl]

    # Prefill KV cache written directly in head-split layout, bf16.
    kc_ref[0] = k_sc[...]
    vc_ref[0] = v_sc[...]

    qh = q_sc[...]               # (NH, L, hd) bf16
    kh = k_sc[...]
    vh = v_sc[...]

    # All heads at once; 1/sqrt(head_dim) already folded into the q weights.
    scores = jnp.einsum("nld,nmd->nlm", qh, kh,
                        preferred_element_type=jnp.float32)   # (NH, L, L)

    if causal:
        row = jax.lax.broadcasted_iota(jnp.int32, (L, L), 0)
        col = jax.lax.broadcasted_iota(jnp.int32, (L, L), 1)
        mask = jnp.where(col <= row, 0.0, -1e9).astype(jnp.float32)
    else:
        mask = mask_ref[...]
    scores = scores + mask
    scores = scores - jnp.max(scores, axis=-1, keepdims=True)
    e = jnp.exp(scores)
    probs = e * pl.reciprocal(jnp.sum(e, axis=-1, keepdims=True), approx=True)
    ctx = jnp.einsum("nlm,nmd->nld", probs.astype(jnp.bfloat16), vh,
                     preferred_element_type=jnp.float32)      # (NH, L, hd)
    ctx_b = ctx.astype(jnp.bfloat16)

    # Output projection: accumulate each head's (L,hd)@(hd,H) into the f32
    # residual -> no (NH, L, H) f32 intermediate, no lane-axis concatenate.
    h_mid = x
    for h in range(num_heads):
        h_mid = h_mid + jnp.dot(ctx_b[h], wo_ref[h],
                                preferred_element_type=jnp.float32)

    # ---------------- MLP (SwiGLU) ----------------
    h2 = _rms_norm(h_mid, eps)   # ln2 gain folded into w_gu rows
    gu = jnp.dot(h2.astype(jnp.bfloat16), wgu_ref[...],
                 preferred_element_type=jnp.float32)          # (L, 2I) = 128 lanes
    g, u = gu[:, :I], gu[:, I:]
    act = g * jax.nn.sigmoid(g)                               # SiLU
    mlp = jnp.dot((act * u).astype(jnp.bfloat16), wd_ref[...],
                  preferred_element_type=jnp.float32)

    out_ref[0] = h_mid + mlp


# ----------------------------------------------------------------------------
# Glue: RoPE tables, causal mask, fused-weight preprocessing, wrapper
# ----------------------------------------------------------------------------
def rope_tables(L, head_dim, base, linear_scale, num_heads, offset=0):
    D = head_dim // 2
    dim_pos = jnp.arange(D, dtype=jnp.float32)
    pos = jnp.arange(offset, offset + L, dtype=jnp.float32) / linear_scale
    freq = jnp.exp(-dim_pos * (math.log(base) / D))
    m_theta = pos[:, None] * freq[None, :]                    # (L, D)
    cos, sin = jnp.cos(m_theta), jnp.sin(m_theta)
    cos_full = jnp.tile(jnp.concatenate([cos, cos], axis=-1), (1, num_heads))
    sin_full = jnp.tile(jnp.concatenate([-sin, sin], axis=-1), (1, num_heads))
    return cos_full, sin_full, cos, sin                       # (L,H),(L,H),(L,D),(L,D)


def causal_mask(L):
    i = jnp.arange(L)[:, None]
    j = jnp.arange(L)[None, :]
    return jnp.where(j <= i, 0.0, -1e9).astype(jnp.float32)


def _swap_rot_halves(w):
    """Per head, swap the two HALF-wide column blocks: [w1, w2] -> [w2, w1]."""
    h_in = w.shape[0]
    w4 = w.reshape(h_in, NUM_HEADS, 2, HALF)
    return w4[:, :, ::-1, :].reshape(h_in, NUM_HEADS * HEAD_DIM)


def build_kernel_params(p):
    f32 = lambda w: w.astype(jnp.float32)
    scale = HEAD_DIM ** (-0.5)
    ln1 = p["ln1"].reshape(HIDDEN, 1)            # fold RMSNorm gains into rows
    ln2 = p["ln2"].reshape(HIDDEN, 1)
    wq = ln1 * f32(p["wq"]) * scale              # also fold 1/sqrt(hd) into q
    wk = ln1 * f32(p["wk"])
    wv = ln1 * f32(p["wv"])
    w_qkv = jnp.concatenate(
        [wq, _swap_rot_halves(wq), wk, _swap_rot_halves(wk), wv],
        axis=1).astype(jnp.bfloat16)                                  # (H, 5H)
    w_gu = (ln2 * jnp.concatenate([f32(p["wg"]), f32(p["wu"])], axis=1)
            ).astype(jnp.bfloat16)                                    # (H, 2I)
    wo_heads = f32(p["wo"]).reshape(NUM_HEADS, HEAD_DIM, HIDDEN
                                    ).astype(jnp.bfloat16)            # (NH, hd, H)
    w_down = p["wd"].astype(jnp.bfloat16)                             # (I, H)
    return {"w_qkv": w_qkv, "wo_heads": wo_heads, "w_gu": w_gu, "w_down": w_down}


def llama_decoder_layer(x, mask, params, offset=0, causal=False):
    B, L, H = x.shape
    cos_full, sin_full, _, _ = rope_tables(L, HEAD_DIM, ROPE_BASE,
                                           ROPE_LINEAR_SCALE, NUM_HEADS, offset)
    kp = build_kernel_params(params)
    kernel = functools.partial(decoder_layer_kernel, num_heads=NUM_HEADS,
                               head_dim=HEAD_DIM, hidden=HIDDEN,
                               inter=INTERMEDIATE, eps=RMS_EPS, causal=causal)

    in_specs = [
        pl.BlockSpec((1, L, H), lambda b: (b, 0, 0)),                    # x
        pl.BlockSpec((L, H), lambda b: (0, 0)),                          # cos
        pl.BlockSpec((L, H), lambda b: (0, 0)),                          # sin
    ]
    operands = [x, cos_full, sin_full]
    if not causal:
        if mask is None:
            mask = jnp.zeros((L, L), jnp.float32)
        in_specs.append(pl.BlockSpec((L, L), lambda b: (0, 0)))          # mask
        operands.append(mask)
    in_specs += [
        pl.BlockSpec((H, 5 * H), lambda b: (0, 0)),                      # fused qkv(+rot)
        pl.BlockSpec((NUM_HEADS, HEAD_DIM, H), lambda b: (0, 0, 0)),     # wo per head
        pl.BlockSpec((H, 2 * INTERMEDIATE), lambda b: (0, 0)),           # fused gate/up
        pl.BlockSpec((INTERMEDIATE, H), lambda b: (0, 0)),               # down
    ]
    operands += [kp["w_qkv"], kp["wo_heads"], kp["w_gu"], kp["w_down"]]

    out, keys, values = pl.pallas_call(
        kernel,
        out_shape=(jax.ShapeDtypeStruct((B, L, H), jnp.float32),
                   jax.ShapeDtypeStruct((B, NUM_HEADS, L, HEAD_DIM), jnp.bfloat16),
                   jax.ShapeDtypeStruct((B, NUM_HEADS, L, HEAD_DIM), jnp.bfloat16)),
        grid=(B,),
        in_specs=in_specs,
        out_specs=(pl.BlockSpec((1, L, H), lambda b: (b, 0, 0)),
                   pl.BlockSpec((1, NUM_HEADS, L, HEAD_DIM), lambda b: (b, 0, 0, 0)),
                   pl.BlockSpec((1, NUM_HEADS, L, HEAD_DIM), lambda b: (b, 0, 0, 0))),
        scratch_shapes=[
            pltpu.VMEM((NUM_HEADS, L, HEAD_DIM), jnp.bfloat16),
            pltpu.VMEM((NUM_HEADS, L, HEAD_DIM), jnp.bfloat16),
            pltpu.VMEM((NUM_HEADS, L, HEAD_DIM), jnp.bfloat16),
        ],
        compiler_params=pltpu.CompilerParams(dimension_semantics=("parallel",)),
    )(*operands)

    # Cache is already (B, NH, L, hd): no post-kernel reshape/transpose.
    return out, (keys, values)


# ----------------------------------------------------------------------------
# Deterministic parameter init (weights stored bf16 so kernel & ref share values)
# ----------------------------------------------------------------------------
def init_params(key):
    ks = jax.random.split(key, 9)
    std = 0.02

    def w(k, shape):
        return (std * jax.random.normal(k, shape, jnp.float32)).astype(jnp.bfloat16)

    return {
        "ln1": 1.0 + 0.1 * jax.random.normal(ks[0], (1, HIDDEN), jnp.float32),
        "ln2": 1.0 + 0.1 * jax.random.normal(ks[1], (1, HIDDEN), jnp.float32),
        "wq": w(ks[2], (HIDDEN, NUM_HEADS * HEAD_DIM)),
        "wk": w(ks[3], (HIDDEN, NUM_KV_HEADS * HEAD_DIM)),
        "wv": w(ks[4], (HIDDEN, NUM_KV_HEADS * HEAD_DIM)),
        "wo": w(ks[5], (NUM_KV_HEADS * HEAD_DIM, HIDDEN)),
        "wg": w(ks[6], (HIDDEN, INTERMEDIATE)),
        "wu": w(ks[7], (HIDDEN, INTERMEDIATE)),
        "wd": w(ks[8], (INTERMEDIATE, HIDDEN)),
    }


# ----------------------------------------------------------------------------
# Pure-JAX f32 reference (mirrors the PyTorch LlamaDecoderLayer.forward)
# ----------------------------------------------------------------------------
def decoder_layer_ref(x, mask, p, cos, sin):
    eps = RMS_EPS
    scale = HEAD_DIM ** (-0.5)
    B, L, H = x.shape
    f32 = lambda w: w.astype(jnp.float32)

    def rms(t, w):
        return w * (t * jax.lax.rsqrt(jnp.mean(t * t, axis=-1, keepdims=True) + eps))

    def split_heads(t):
        return t.reshape(B, L, NUM_HEADS, HEAD_DIM).transpose(0, 2, 1, 3)

    def rope(t):
        t1, t2 = t[..., :HALF], t[..., HALF:]
        return jnp.concatenate([t1 * cos - t2 * sin, t1 * sin + t2 * cos], axis=-1)

    h1 = rms(x, p["ln1"][0])
    q = split_heads(h1 @ f32(p["wq"]))
    k = split_heads(h1 @ f32(p["wk"]))
    v = split_heads(h1 @ f32(p["wv"]))
    rq, rk = rope(q), rope(k)
    scores = scale * jnp.einsum("bnld,bnmd->bnlm", rq, rk)
    if mask is not None:
        scores = scores + mask
    probs = jax.nn.softmax(scores, axis=-1)
    vh = jnp.einsum("bnlm,bnmd->bnld", probs, v).transpose(0, 2, 1, 3).reshape(B, L, H)
    h = x + vh @ f32(p["wo"])
    h2 = rms(h, p["ln2"][0])
    out = h + (jax.nn.silu(h2 @ f32(p["wg"])) * (h2 @ f32(p["wu"]))) @ f32(p["wd"])
    return out, (rk, v)


# ----------------------------------------------------------------------------
if __name__ == "__main__":
    key = jax.random.PRNGKey(0)
    kx, kp = jax.random.split(key)
    params = init_params(kp)
    x = jax.random.normal(kx, (BATCH, SEQ, HIDDEN), jnp.float32)

    # Causal prefill: mask generated in-kernel (no (L,L) DMA).
    out, (keys, values) = llama_decoder_layer(x, None, params, causal=True)
    out = jax.block_until_ready(out)
    assert out.shape == (BATCH, SEQ, HIDDEN) and out.dtype == jnp.float32
    assert keys.shape == (BATCH, NUM_HEADS, SEQ, HEAD_DIM)
    assert values.shape == (BATCH, NUM_HEADS, SEQ, HEAD_DIM)

    _, _, cos, sin = rope_tables(SEQ, HEAD_DIM, ROPE_BASE, ROPE_LINEAR_SCALE, NUM_HEADS)
    with jax.default_matmul_precision("float32"):
        ref_out, (ref_k, ref_v) = decoder_layer_ref(x, causal_mask(SEQ), params, cos, sin)
    ref_out = jax.block_until_ready(ref_out)

    # bf16 matmuls / bf16 KV cache in the kernel vs f32 reference -> loosened
    # tolerance (and pl.reciprocal(approx=True) means probs don't sum to exactly 1).
    for got, ref, name in ((out, ref_out, "out"),
                           (keys, ref_k, "keys"),
                           (values, ref_v, "values")):
        got = got.astype(jnp.float32)
        assert jnp.allclose(got, ref, atol=3e-2, rtol=3e-2), (
            f"{name}: max abs diff {jnp.max(jnp.abs(got - ref))}")

    print("KERNEL_OK")
</pallas_src>

<mosaic_0001>
module attributes {stable_mosaic.version = 11 : i64} {
  func.func @decoder_layer_kernel(%arg0: i32, %arg1: memref<1x8x32xf32, #tpu.memory_space<vmem>>, %arg2: memref<8x32xf32, #tpu.memory_space<vmem>>, %arg3: memref<8x32xf32, #tpu.memory_space<vmem>>, %arg4: memref<32x160xbf16, #tpu.memory_space<vmem>>, %arg5: memref<4x8x32xbf16, #tpu.memory_space<vmem>>, %arg6: memref<32x128xbf16, #tpu.memory_space<vmem>>, %arg7: memref<64x32xbf16, #tpu.memory_space<vmem>>, %arg8: memref<1x8x32xf32, #tpu.memory_space<vmem>>, %arg9: memref<1x4x8x8xbf16, #tpu.memory_space<vmem>>, %arg10: memref<1x4x8x8xbf16, #tpu.memory_space<vmem>>, %arg11: memref<4x8x8xbf16, #tpu.memory_space<vmem>>, %arg12: memref<4x8x8xbf16, #tpu.memory_space<vmem>>, %arg13: memref<4x8x8xbf16, #tpu.memory_space<vmem>>) attributes {dimension_semantics = [#tpu.dimension_semantics<parallel>], iteration_bounds = array<i64: 2>, scalar_prefetch = 0 : i64, scratch_operands = 3 : i64, tpu.core_type = #tpu.core_type<tc>, window_params = [{transform_indices = @transform_0, window_bounds = array<i64: 1, 8, 32>}, {pipeline_mode = #tpu.pipeline_mode<synchronous>, transform_indices = @transform_1, window_bounds = array<i64: 8, 32>}, {pipeline_mode = #tpu.pipeline_mode<synchronous>, transform_indices = @transform_2, window_bounds = array<i64: 8, 32>}, {pipeline_mode = #tpu.pipeline_mode<synchronous>, transform_indices = @transform_3, window_bounds = array<i64: 32, 160>}, {pipeline_mode = #tpu.pipeline_mode<synchronous>, transform_indices = @transform_4, window_bounds = array<i64: 4, 8, 32>}, {pipeline_mode = #tpu.pipeline_mode<synchronous>, transform_indices = @transform_5, window_bounds = array<i64: 32, 128>}, {pipeline_mode = #tpu.pipeline_mode<synchronous>, transform_indices = @transform_6, window_bounds = array<i64: 64, 32>}, {transform_indices = @transform_7, window_bounds = array<i64: 1, 8, 32>}, {transform_indices = @transform_8, window_bounds = array<i64: 1, 4, 8, 8>}, {transform_indices = @transform_9, window_bounds = array<i64: 1, 4, 8, 8>}]} {
    %c0 = arith.constant 0 : index
    %c0_0 = arith.constant 0 : index
    %c0_1 = arith.constant 0 : index
    %0 = vector.load %arg1[%c0, %c0_0, %c0_1] : memref<1x8x32xf32, #tpu.memory_space<vmem>>, vector<1x8x32xf32>
    %1 = vector.shape_cast %0 : vector<1x8x32xf32> to vector<8x32xf32>
    %c0_2 = arith.constant 0 : index
    %c0_3 = arith.constant 0 : index
    %2 = vector.load %arg2[%c0_2, %c0_3] : memref<8x32xf32, #tpu.memory_space<vmem>>, vector<8x32xf32>
    %c0_4 = arith.constant 0 : index
    %c0_5 = arith.constant 0 : index
    %3 = vector.load %arg3[%c0_4, %c0_5] : memref<8x32xf32, #tpu.memory_space<vmem>>, vector<8x32xf32>
    %4 = arith.mulf %1, %1 : vector<8x32xf32>
    %cst = arith.constant dense<0.000000e+00> : vector<8xf32>
    %5 = vector.multi_reduction <add>, %4, %cst [1] : vector<8x32xf32> to vector<8xf32>
    %6 = vector.shape_cast %5 : vector<8xf32> to vector<8x1xf32>
    %cst_6 = arith.constant 3.200000e+01 : f32
    %7 = vector.broadcast %cst_6 : f32 to vector<8x1xf32>
    %8 = arith.divf %6, %7 : vector<8x1xf32>
    %cst_7 = arith.constant 9.99999997E-7 : f32
    %9 = vector.broadcast %cst_7 : f32 to vector<8x1xf32>
    %10 = arith.addf %8, %9 : vector<8x1xf32>
    %11 = math.rsqrt %10 : vector<8x1xf32>
    %12 = vector.broadcast %11 : vector<8x1xf32> to vector<8x32xf32>
    %13 = arith.mulf %1, %12 : vector<8x32xf32>
    %14 = arith.truncf %13 : vector<8x32xf32> to vector<8x32xbf16>
    %c0_8 = arith.constant 0 : index
    %c0_9 = arith.constant 0 : index
    %15 = vector.load %arg4[%c0_8, %c0_9] : memref<32x160xbf16, #tpu.memory_space<vmem>>, vector<32x160xbf16>
    %cst_10 = arith.constant dense<0.000000e+00> : vector<8x160xf32>
    %16 = tpu.matmul %14, %15, %cst_10 {dimension_numbers = #tpu.dot_dimension_numbers<[1], [0], [0], [1], [0, 0, 1, 1], [], []>} : vector<8x32xbf16>, vector<32x160xbf16>, vector<8x160xf32> -> vector<8x160xf32>
    %17 = vector.extract_strided_slice %16 {offsets = [0, 0], sizes = [8, 32], strides = [1, 1]} : vector<8x160xf32> to vector<8x32xf32>
    %18 = vector.extract_strided_slice %16 {offsets = [0, 32], sizes = [8, 32], strides = [1, 1]} : vector<8x160xf32> to vector<8x32xf32>
    %19 = vector.extract_strided_slice %16 {offsets = [0, 64], sizes = [8, 32], strides = [1, 1]} : vector<8x160xf32> to vector<8x32xf32>
    %20 = vector.extract_strided_slice %16 {offsets = [0, 96], sizes = [8, 32], strides = [1, 1]} : vector<8x160xf32> to vector<8x32xf32>
    %21 = vector.extract_strided_slice %16 {offsets = [0, 128], sizes = [8, 32], strides = [1, 1]} : vector<8x160xf32> to vector<8x32xf32>
    %22 = arith.mulf %17, %2 : vector<8x32xf32>
    %23 = arith.mulf %18, %3 : vector<8x32xf32>
    %24 = arith.addf %22, %23 : vector<8x32xf32>
    %25 = arith.truncf %24 : vector<8x32xf32> to vector<8x32xbf16>
    %26 = arith.mulf %19, %2 : vector<8x32xf32>
    %27 = arith.mulf %20, %3 : vector<8x32xf32>
    %28 = arith.addf %26, %27 : vector<8x32xf32>
    %29 = arith.truncf %28 : vector<8x32xf32> to vector<8x32xbf16>
    %30 = arith.truncf %21 : vector<8x32xf32> to vector<8x32xbf16>
    %31 = vector.extract_strided_slice %25 {offsets = [0, 0], sizes = [8, 8], strides = [1, 1]} : vector<8x32xbf16> to vector<8x8xbf16>
    %c0_11 = arith.constant 0 : index
    %c0_12 = arith.constant 0 : index
    %c0_13 = arith.constant 0 : index
    %32 = vector.load %arg11[%c0_11, %c0_12, %c0_13] : memref<4x8x8xbf16, #tpu.memory_space<vmem>>, vector<1x8x8xbf16>
    %33 = vector.shape_cast %32 : vector<1x8x8xbf16> to vector<8x8xbf16>
    %34 = vector.shape_cast %31 : vector<8x8xbf16> to vector<1x8x8xbf16>
    tpu.vector_store %arg11[%c0_11, %c0_12, %c0_13], %34 {strides = array<i32>} : memref<4x8x8xbf16, #tpu.memory_space<vmem>>, vector<1x8x8xbf16>,
    %35 = vector.extract_strided_slice %29 {offsets = [0, 0], sizes = [8, 8], strides = [1, 1]} : vector<8x32xbf16> to vector<8x8xbf16>
    %c0_14 = arith.constant 0 : index
    %c0_15 = arith.constant 0 : index
    %c0_16 = arith.constant 0 : index
    %36 = vector.load %arg12[%c0_14, %c0_15, %c0_16] : memref<4x8x8xbf16, #tpu.memory_space<vmem>>, vector<1x8x8xbf16>
    %37 = vector.shape_cast %36 : vector<1x8x8xbf16> to vector<8x8xbf16>
    %38 = vector.shape_cast %35 : vector<8x8xbf16> to vector<1x8x8xbf16>
    tpu.vector_store %arg12[%c0_14, %c0_15, %c0_16], %38 {strides = array<i32>} : memref<4x8x8xbf16, #tpu.memory_space<vmem>>, vector<1x8x8xbf16>,
    %39 = vector.extract_strided_slice %30 {offsets = [0, 0], sizes = [8, 8], strides = [1, 1]} : vector<8x32xbf16> to vector<8x8xbf16>
    %c0_17 = arith.constant 0 : index
    %c0_18 = arith.constant 0 : index
    %c0_19 = arith.constant 0 : index
    %40 = vector.load %arg13[%c0_17, %c0_18, %c0_19] : memref<4x8x8xbf16, #tpu.memory_space<vmem>>, vector<1x8x8xbf16>
    %41 = vector.shape_cast %40 : vector<1x8x8xbf16> to vector<8x8xbf16>
    %42 = vector.shape_cast %39 : vector<8x8xbf16> to vector<1x8x8xbf16>
    tpu.vector_store %arg13[%c0_17, %c0_18, %c0_19], %42 {strides = array<i32>} : memref<4x8x8xbf16, #tpu.memory_space<vmem>>, vector<1x8x8xbf16>,
    %43 = vector.extract_strided_slice %25 {offsets = [0, 8], sizes = [8, 8], strides = [1, 1]} : vector<8x32xbf16> to vector<8x8xbf16>
    %c1 = arith.constant 1 : index
    %c0_20 = arith.constant 0 : index
    %c0_21 = arith.constant 0 : index
    %44 = vector.load %arg11[%c1, %c0_20, %c0_21] : memref<4x8x8xbf16, #tpu.memory_space<vmem>>, vector<1x8x8xbf16>
    %45 = vector.shape_cast %44 : vector<1x8x8xbf16> to vector<8x8xbf16>
    %46 = vector.shape_cast %43 : vector<8x8xbf16> to vector<1x8x8xbf16>
    tpu.vector_store %arg11[%c1, %c0_20, %c0_21], %46 {strides = array<i32>} : memref<4x8x8xbf16, #tpu.memory_space<vmem>>, vector<1x8x8xbf16>,
    %47 = vector.extract_strided_slice %29 {offsets = [0, 8], sizes = [8, 8], strides = [1, 1]} : vector<8x32xbf16> to vector<8x8xbf16>
    %c1_22 = arith.constant 1 : index
    %c0_23 = arith.constant 0 : index
    %c0_24 = arith.constant 0 : index
    %48 = vector.load %arg12[%c1_22, %c0_23, %c0_24] : memref<4x8x8xbf16, #tpu.memory_space<vmem>>, vector<1x8x8xbf16>
    %49 = vector.shape_cast %48 : vector<1x8x8xbf16> to vector<8x8xbf16>
    %50 = vector.shape_cast %47 : vector<8x8xbf16> to vector<1x8x8xbf16>
    tpu.vector_store %arg12[%c1_22, %c0_23, %c0_24], %50 {strides = array<i32>} : memref<4x8x8xbf16, #tpu.memory_space<vmem>>, vector<1x8x8xbf16>,
    %51 = vector.extract_strided_slice %30 {offsets = [0, 8], sizes = [8, 8], strides = [1, 1]} : vector<8x32xbf16> to vector<8x8xbf16>
    %c1_25 = arith.constant 1 : index
    %c0_26 = arith.constant 0 : index
    %c0_27 = arith.constant 0 : index
    %52 = vector.load %arg13[%c1_25, %c0_26, %c0_27] : memref<4x8x8xbf16, #tpu.memory_space<vmem>>, vector<1x8x8xbf16>
    %53 = vector.shape_cast %52 : vector<1x8x8xbf16> to vector<8x8xbf16>
    %54 = vector.shape_cast %51 : vector<8x8xbf16> to vector<1x8x8xbf16>
    tpu.vector_store %arg13[%c1_25, %c0_26, %c0_27], %54 {strides = array<i32>} : memref<4x8x8xbf16, #tpu.memory_space<vmem>>, vector<1x8x8xbf16>,
    %55 = vector.extract_strided_slice %25 {offsets = [0, 16], sizes = [8, 8], strides = [1, 1]} : vector<8x32xbf16> to vector<8x8xbf16>
    %c2 = arith.constant 2 : index
    %c0_28 = arith.constant 0 : index
    %c0_29 = arith.constant 0 : index
    %56 = vector.load %arg11[%c2, %c0_28, %c0_29] : memref<4x8x8xbf16, #tpu.memory_space<vmem>>, vector<1x8x8xbf16>
    %57 = vector.shape_cast %56 : vector<1x8x8xbf16> to vector<8x8xbf16>
    %58 = vector.shape_cast %55 : vector<8x8xbf16> to vector<1x8x8xbf16>
    tpu.vector_store %arg11[%c2, %c0_28, %c0_29], %58 {strides = array<i32>} : memref<4x8x8xbf16, #tpu.memory_space<vmem>>, vector<1x8x8xbf16>,
    %59 = vector.extract_strided_slice %29 {offsets = [0, 16], sizes = [8, 8], strides = [1, 1]} : vector<8x32xbf16> to vector<8x8xbf16>
    %c2_30 = arith.constant 2 : index
    %c0_31 = arith.constant 0 : index
    %c0_32 = arith.constant 0 : index
    %60 = vector.load %arg12[%c2_30, %c0_31, %c0_32] : memref<4x8x8xbf16, #tpu.memory_space<vmem>>, vector<1x8x8xbf16>
    %61 = vector.shape_cast %60 : vector<1x8x8xbf16> to vector<8x8xbf16>
    %62 = vector.shape_cast %59 : vector<8x8xbf16> to vector<1x8x8xbf16>
    tpu.vector_store %arg12[%c2_30, %c0_31, %c0_32], %62 {strides = array<i32>} : memref<4x8x8xbf16, #tpu.memory_space<vmem>>, vector<1x8x8xbf16>,
    %63 = vector.extract_strided_slice %30 {offsets = [0, 16], sizes = [8, 8], strides = [1, 1]} : vector<8x32xbf16> to vector<8x8xbf16>
    %c2_33 = arith.constant 2 : index
    %c0_34 = arith.constant 0 : index
    %c0_35 = arith.constant 0 : index
    %64 = vector.load %arg13[%c2_33, %c0_34, %c0_35] : memref<4x8x8xbf16, #tpu.memory_space<vmem>>, vector<1x8x8xbf16>
    %65 = vector.shape_cast %64 : vector<1x8x8xbf16> to vector<8x8xbf16>
    %66 = vector.shape_cast %63 : vector<8x8xbf16> to vector<1x8x8xbf16>
    tpu.vector_store %arg13[%c2_33, %c0_34, %c0_35], %66 {strides = array<i32>} : memref<4x8x8xbf16, #tpu.memory_space<vmem>>, vector<1x8x8xbf16>,
    %67 = vector.extract_strided_slice %25 {offsets = [0, 24], sizes = [8, 8], strides = [1, 1]} : vector<8x32xbf16> to vector<8x8xbf16>
    %c3 = arith.constant 3 : index
    %c0_36 = arith.constant 0 : index
    %c0_37 = arith.constant 0 : index
    %68 = vector.load %arg11[%c3, %c0_36, %c0_37] : memref<4x8x8xbf16, #tpu.memory_space<vmem>>, vector<1x8x8xbf16>
    %69 = vector.shape_cast %68 : vector<1x8x8xbf16> to vector<8x8xbf16>
    %70 = vector.shape_cast %67 : vector<8x8xbf16> to vector<1x8x8xbf16>
    tpu.vector_store %arg11[%c3, %c0_36, %c0_37], %70 {strides = array<i32>} : memref<4x8x8xbf16, #tpu.memory_space<vmem>>, vector<1x8x8xbf16>,
    %71 = vector.extract_strided_slice %29 {offsets = [0, 24], sizes = [8, 8], strides = [1, 1]} : vector<8x32xbf16> to vector<8x8xbf16>
    %c3_38 = arith.constant 3 : index
    %c0_39 = arith.constant 0 : index
    %c0_40 = arith.constant 0 : index
    %72 = vector.load %arg12[%c3_38, %c0_39, %c0_40] : memref<4x8x8xbf16, #tpu.memory_space<vmem>>, vector<1x8x8xbf16>
    %73 = vector.shape_cast %72 : vector<1x8x8xbf16> to vector<8x8xbf16>
    %74 = vector.shape_cast %71 : vector<8x8xbf16> to vector<1x8x8xbf16>
    tpu.vector_store %arg12[%c3_38, %c0_39, %c0_40], %74 {strides = array<i32>} : memref<4x8x8xbf16, #tpu.memory_space<vmem>>, vector<1x8x8xbf16>,
    %75 = vector.extract_strided_slice %30 {offsets = [0, 24], sizes = [8, 8], strides = [1, 1]} : vector<8x32xbf16> to vector<8x8xbf16>
    %c3_41 = arith.constant 3 : index
    %c0_42 = arith.constant 0 : index
    %c0_43 = arith.constant 0 : index
    %76 = vector.load %arg13[%c3_41, %c0_42, %c0_43] : memref<4x8x8xbf16, #tpu.memory_space<vmem>>, vector<1x8x8xbf16>
    %77 = vector.shape_cast %76 : vector<1x8x8xbf16> to vector<8x8xbf16>
    %78 = vector.shape_cast %75 : vector<8x8xbf16> to vector<1x8x8xbf16>
    tpu.vector_store %arg13[%c3_41, %c0_42, %c0_43], %78 {strides = array<i32>} : memref<4x8x8xbf16, #tpu.memory_space<vmem>>, vector<1x8x8xbf16>,
    %c0_44 = arith.constant 0 : index
    %c0_45 = arith.constant 0 : index
    %c0_46 = arith.constant 0 : index
    %79 = vector.load %arg12[%c0_44, %c0_45, %c0_46] : memref<4x8x8xbf16, #tpu.memory_space<vmem>>, vector<4x8x8xbf16>
    %c0_47 = arith.constant 0 : index
    %c0_48 = arith.constant 0 : index
    %c0_49 = arith.constant 0 : index
    %c0_50 = arith.constant 0 : index
    %80 = vector.load %arg9[%c0_47, %c0_48, %c0_49, %c0_50] : memref<1x4x8x8xbf16, #tpu.memory_space<vmem>>, vector<1x4x8x8xbf16>
    %81 = vector.shape_cast %80 : vector<1x4x8x8xbf16> to vector<4x8x8xbf16>
    %82 = vector.shape_cast %79 : vector<4x8x8xbf16> to vector<1x4x8x8xbf16>
    tpu.vector_store %arg9[%c0_47, %c0_48, %c0_49, %c0_50], %82 {strides = array<i32>} : memref<1x4x8x8xbf16, #tpu.memory_space<vmem>>, vector<1x4x8x8xbf16>,
    %c0_51 = arith.constant 0 : index
    %c0_52 = arith.constant 0 : index
    %c0_53 = arith.constant 0 : index
    %83 = vector.load %arg13[%c0_51, %c0_52, %c0_53] : memref<4x8x8xbf16, #tpu.memory_space<vmem>>, vector<4x8x8xbf16>
    %c0_54 = arith.constant 0 : index
    %c0_55 = arith.constant 0 : index
    %c0_56 = arith.constant 0 : index
    %c0_57 = arith.constant 0 : index
    %84 = vector.load %arg10[%c0_54, %c0_55, %c0_56, %c0_57] : memref<1x4x8x8xbf16, #tpu.memory_space<vmem>>, vector<1x4x8x8xbf16>
    %85 = vector.shape_cast %84 : vector<1x4x8x8xbf16> to vector<4x8x8xbf16>
    %86 = vector.shape_cast %83 : vector<4x8x8xbf16> to vector<1x4x8x8xbf16>
    tpu.vector_store %arg10[%c0_54, %c0_55, %c0_56, %c0_57], %86 {strides = array<i32>} : memref<1x4x8x8xbf16, #tpu.memory_space<vmem>>, vector<1x4x8x8xbf16>,
    %c0_58 = arith.constant 0 : index
    %c0_59 = arith.constant 0 : index
    %c0_60 = arith.constant 0 : index
    %87 = vector.load %arg11[%c0_58, %c0_59, %c0_60] : memref<4x8x8xbf16, #tpu.memory_space<vmem>>, vector<4x8x8xbf16>
    %c0_61 = arith.constant 0 : index
    %c0_62 = arith.constant 0 : index
    %c0_63 = arith.constant 0 : index
    %88 = vector.load %arg12[%c0_61, %c0_62, %c0_63] : memref<4x8x8xbf16, #tpu.memory_space<vmem>>, vector<4x8x8xbf16>
    %c0_64 = arith.constant 0 : index
    %c0_65 = arith.constant 0 : index
    %c0_66 = arith.constant 0 : index
    %89 = vector.load %arg13[%c0_64, %c0_65, %c0_66] : memref<4x8x8xbf16, #tpu.memory_space<vmem>>, vector<4x8x8xbf16>
    "tpu.trace_start"() <{level = 10 : i32, message = "nld,nmd->nlm"}> : () -> ()
    %cst_67 = arith.constant dense<0.000000e+00> : vector<4x8x8xf32>
    %90 = tpu.matmul %87, %88, %cst_67 {dimension_numbers = #tpu.dot_dimension_numbers<[2], [2], [1], [1], [0, 0, 0, 1, 1, 1], [0], [0]>} : vector<4x8x8xbf16>, vector<4x8x8xbf16>, vector<4x8x8xf32> -> vector<4x8x8xf32>
    "tpu.trace_stop"() : () -> ()
    %91 = tpu.iota {dimensions = array<i32: 0>} : vector<8x8xi32>
    %92 = tpu.iota {dimensions = array<i32: 1>} : vector<8x8xi32>
    %93 = arith.cmpi sle, %92, %91 : vector<8x8xi32>
    %cst_68 = arith.constant 0.000000e+00 : f32
    %cst_69 = arith.constant -1.000000e+09 : f32
    %94 = vector.broadcast %cst_68 : f32 to vector<8x8xf32>
    %95 = vector.broadcast %cst_69 : f32 to vector<8x8xf32>
    %96 = arith.select %93, %94, %95 : vector<8x8xi1>, vector<8x8xf32>
    %97 = vector.shape_cast %96 : vector<8x8xf32> to vector<1x8x8xf32>
    %98 = vector.broadcast %97 : vector<1x8x8xf32> to vector<4x8x8xf32>
    %99 = arith.addf %90, %98 : vector<4x8x8xf32>
    %cst_70 = arith.constant dense<0xFF800000> : vector<4x8xf32>
    %100 = vector.multi_reduction <maximumf>, %99, %cst_70 [2] : vector<4x8x8xf32> to vector<4x8xf32>
    %101 = vector.shape_cast %100 : vector<4x8xf32> to vector<4x8x1xf32>
    %102 = vector.broadcast %101 : vector<4x8x1xf32> to vector<4x8x8xf32>
    %103 = arith.subf %99, %102 : vector<4x8x8xf32>
    %104 = math.exp %103 : vector<4x8x8xf32>
    %cst_71 = arith.constant dense<0.000000e+00> : vector<4x8xf32>
    %105 = vector.multi_reduction <add>, %104, %cst_71 [2] : vector<4x8x8xf32> to vector<4x8xf32>
    %106 = vector.shape_cast %105 : vector<4x8xf32> to vector<4x8x1xf32>
    %107 = tpu.reciprocal %106 {approx = true} : vector<4x8x1xf32> -> vector<4x8x1xf32>
    %108 = vector.broadcast %107 : vector<4x8x1xf32> to vector<4x8x8xf32>
    %109 = arith.mulf %104, %108 : vector<4x8x8xf32>
    %110 = arith.truncf %109 : vector<4x8x8xf32> to vector<4x8x8xbf16>
    "tpu.trace_start"() <{level = 10 : i32, message = "nlm,nmd->nld"}> : () -> ()
    %cst_72 = arith.constant dense<0.000000e+00> : vector<4x8x8xf32>
    %111 = tpu.matmul %110, %89, %cst_72 {dimension_numbers = #tpu.dot_dimension_numbers<[2], [1], [1], [2], [0, 0, 0, 1, 1, 2], [0], [0]>} : vector<4x8x8xbf16>, vector<4x8x8xbf16>, vector<4x8x8xf32> -> vector<4x8x8xf32>
    "tpu.trace_stop"() : () -> ()
    %112 = arith.truncf %111 : vector<4x8x8xf32> to vector<4x8x8xbf16>
    %113 = vector.extract_strided_slice %112 {offsets = [0, 0, 0], sizes = [1, 8, 8], strides = [1, 1, 1]} : vector<4x8x8xbf16> to vector<1x8x8xbf16>
    %114 = vector.shape_cast %113 : vector<1x8x8xbf16> to vector<8x8xbf16>
    %c0_73 = arith.constant 0 : index
    %c0_74 = arith.constant 0 : index
    %c0_75 = arith.constant 0 : index
    %115 = vector.load %arg5[%c0_73, %c0_74, %c0_75] : memref<4x8x32xbf16, #tpu.memory_space<vmem>>, vector<1x8x32xbf16>
    %116 = vector.shape_cast %115 : vector<1x8x32xbf16> to vector<8x32xbf16>
    %cst_76 = arith.constant dense<0.000000e+00> : vector<8x32xf32>
    %117 = tpu.matmul %114, %116, %cst_76 {dimension_numbers = #tpu.dot_dimension_numbers<[1], [0], [0], [1], [0, 0, 1, 1], [], []>} : vector<8x8xbf16>, vector<8x32xbf16>, vector<8x32xf32> -> vector<8x32xf32>
    %118 = arith.addf %1, %117 : vector<8x32xf32>
    %119 = vector.extract_strided_slice %112 {offsets = [1, 0, 0], sizes = [1, 8, 8], strides = [1, 1, 1]} : vector<4x8x8xbf16> to vector<1x8x8xbf16>
    %120 = vector.shape_cast %119 : vector<1x8x8xbf16> to vector<8x8xbf16>
    %c1_77 = arith.constant 1 : index
    %c0_78 = arith.constant 0 : index
    %c0_79 = arith.constant 0 : index
    %121 = vector.load %arg5[%c1_77, %c0_78, %c0_79] : memref<4x8x32xbf16, #tpu.memory_space<vmem>>, vector<1x8x32xbf16>
    %122 = vector.shape_cast %121 : vector<1x8x32xbf16> to vector<8x32xbf16>
    %cst_80 = arith.constant dense<0.000000e+00> : vector<8x32xf32>
    %123 = tpu.matmul %120, %122, %cst_80 {dimension_numbers = #tpu.dot_dimension_numbers<[1], [0], [0], [1], [0, 0, 1, 1], [], []>} : vector<8x8xbf16>, vector<8x32xbf16>, vector<8x32xf32> -> vector<8x32xf32>
    %124 = arith.addf %118, %123 : vector<8x32xf32>
    %125 = vector.extract_strided_slice %112 {offsets = [2, 0, 0], sizes = [1, 8, 8], strides = [1, 1, 1]} : vector<4x8x8xbf16> to vector<1x8x8xbf16>
    %126 = vector.shape_cast %125 : vector<1x8x8xbf16> to vector<8x8xbf16>
    %c2_81 = arith.constant 2 : index
    %c0_82 = arith.constant 0 : index
    %c0_83 = arith.constant 0 : index
    %127 = vector.load %arg5[%c2_81, %c0_82, %c0_83] : memref<4x8x32xbf16, #tpu.memory_space<vmem>>, vector<1x8x32xbf16>
    %128 = vector.shape_cast %127 : vector<1x8x32xbf16> to vector<8x32xbf16>
    %cst_84 = arith.constant dense<0.000000e+00> : vector<8x32xf32>
    %129 = tpu.matmul %126, %128, %cst_84 {dimension_numbers = #tpu.dot_dimension_numbers<[1], [0], [0], [1], [0, 0, 1, 1], [], []>} : vector<8x8xbf16>, vector<8x32xbf16>, vector<8x32xf32> -> vector<8x32xf32>
    %130 = arith.addf %124, %129 : vector<8x32xf32>
    %131 = vector.extract_strided_slice %112 {offsets = [3, 0, 0], sizes = [1, 8, 8], strides = [1, 1, 1]} : vector<4x8x8xbf16> to vector<1x8x8xbf16>
    %132 = vector.shape_cast %131 : vector<1x8x8xbf16> to vector<8x8xbf16>
    %c3_85 = arith.constant 3 : index
    %c0_86 = arith.constant 0 : index
    %c0_87 = arith.constant 0 : index
    %133 = vector.load %arg5[%c3_85, %c0_86, %c0_87] : memref<4x8x32xbf16, #tpu.memory_space<vmem>>, vector<1x8x32xbf16>
    %134 = vector.shape_cast %133 : vector<1x8x32xbf16> to vector<8x32xbf16>
    %cst_88 = arith.constant dense<0.000000e+00> : vector<8x32xf32>
    %135 = tpu.matmul %132, %134, %cst_88 {dimension_numbers = #tpu.dot_dimension_numbers<[1], [0], [0], [1], [0, 0, 1, 1], [], []>} : vector<8x8xbf16>, vector<8x32xbf16>, vector<8x32xf32> -> vector<8x32xf32>
    %136 = arith.addf %130, %135 : vector<8x32xf32>
    %137 = arith.mulf %136, %136 : vector<8x32xf32>
    %cst_89 = arith.constant dense<0.000000e+00> : vector<8xf32>
    %138 = vector.multi_reduction <add>, %137, %cst_89 [1] : vector<8x32xf32> to vector<8xf32>
    %139 = vector.shape_cast %138 : vector<8xf32> to vector<8x1xf32>
    %cst_90 = arith.constant 3.200000e+01 : f32
    %140 = vector.broadcast %cst_90 : f32 to vector<8x1xf32>
    %141 = arith.divf %139, %140 : vector<8x1xf32>
    %cst_91 = arith.constant 9.99999997E-7 : f32
    %142 = vector.broadcast %cst_91 : f32 to vector<8x1xf32>
    %143 = arith.addf %141, %142 : vector<8x1xf32>
    %144 = math.rsqrt %143 : vector<8x1xf32>
    %145 = vector.broadcast %144 : vector<8x1xf32> to vector<8x32xf32>
    %146 = arith.mulf %136, %145 : vector<8x32xf32>
    %147 = arith.truncf %146 : vector<8x32xf32> to vector<8x32xbf16>
    %c0_92 = arith.constant 0 : index
    %c0_93 = arith.constant 0 : index
    %148 = vector.load %arg6[%c0_92, %c0_93] : memref<32x128xbf16, #tpu.memory_space<vmem>>, vector<32x128xbf16>
    %cst_94 = arith.constant dense<0.000000e+00> : vector<8x128xf32>
    %149 = tpu.matmul %147, %148, %cst_94 {dimension_numbers = #tpu.dot_dimension_numbers<[1], [0], [0], [1], [0, 0, 1, 1], [], []>} : vector<8x32xbf16>, vector<32x128xbf16>, vector<8x128xf32> -> vector<8x128xf32>
    %150 = vector.extract_strided_slice %149 {offsets = [0, 0], sizes = [8, 64], strides = [1, 1]} : vector<8x128xf32> to vector<8x64xf32>
    %151 = vector.extract_strided_slice %149 {offsets = [0, 64], sizes = [8, 64], strides = [1, 1]} : vector<8x128xf32> to vector<8x64xf32>
    %152 = arith.negf %150 : vector<8x64xf32>
    %153 = math.exp %152 : vector<8x64xf32>
    %cst_95 = arith.constant 1.000000e+00 : f32
    %154 = vector.broadcast %cst_95 : f32 to vector<8x64xf32>
    %155 = arith.addf %154, %153 : vector<8x64xf32>
    %156 = arith.divf %154, %155 : vector<8x64xf32>
    %157 = arith.mulf %150, %156 : vector<8x64xf32>
    %158 = arith.mulf %157, %151 : vector<8x64xf32>
    %159 = arith.truncf %158 : vector<8x64xf32> to vector<8x64xbf16>
    %c0_96 = arith.constant 0 : index
    %c0_97 = arith.constant 0 : index
    %160 = vector.load %arg7[%c0_96, %c0_97] : memref<64x32xbf16, #tpu.memory_space<vmem>>, vector<64x32xbf16>
    %cst_98 = arith.constant dense<0.000000e+00> : vector<8x32xf32>
    %161 = tpu.matmul %159, %160, %cst_98 {dimension_numbers = #tpu.dot_dimension_numbers<[1], [0], [0], [1], [0, 0, 1, 1], [], []>} : vector<8x64xbf16>, vector<64x32xbf16>, vector<8x32xf32> -> vector<8x32xf32>
    %162 = arith.addf %136, %161 : vector<8x32xf32>
    %c0_99 = arith.constant 0 : index
    %c0_100 = arith.constant 0 : index
    %c0_101 = arith.constant 0 : index
    %163 = vector.load %arg8[%c0_99, %c0_100, %c0_101] : memref<1x8x32xf32, #tpu.memory_space<vmem>>, vector<1x8x32xf32>
    %164 = vector.shape_cast %163 : vector<1x8x32xf32> to vector<8x32xf32>
    %165 = vector.shape_cast %162 : vector<8x32xf32> to vector<1x8x32xf32>
    tpu.vector_store %arg8[%c0_99, %c0_100, %c0_101], %165 {strides = array<i32>} : memref<1x8x32xf32, #tpu.memory_space<vmem>>, vector<1x8x32xf32>,
    return
  }
  func.func @transform_0(%arg0: i32) -> (i32, i32, i32) {
    %c0_i32 = arith.constant 0 : i32
    %c0_i32_0 = arith.constant 0 : i32
    %c0_i32_1 = arith.constant 0 : i32
    return %arg0, %c0_i32, %c0_i32_0 : i32, i32, i32
  }
  func.func @transform_1(%arg0: i32) -> (i32, i32) {
    %c0_i32 = arith.constant 0 : i32
    %c0_i32_0 = arith.constant 0 : i32
    %c0_i32_1 = arith.constant 0 : i32
    return %c0_i32, %c0_i32_0 : i32, i32
  }
  func.func @transform_2(%arg0: i32) -> (i32, i32) {
    %c0_i32 = arith.constant 0 : i32
    %c0_i32_0 = arith.constant 0 : i32
    %c0_i32_1 = arith.constant 0 : i32
    return %c0_i32, %c0_i32_0 : i32, i32
  }
  func.func @transform_3(%arg0: i32) -> (i32, i32) {
    %c0_i32 = arith.constant 0 : i32
    %c0_i32_0 = arith.constant 0 : i32
    %c0_i32_1 = arith.constant 0 : i32
    return %c0_i32, %c0_i32_0 : i32, i32
  }
  func.func @transform_4(%arg0: i32) -> (i32, i32, i32) {
    %c0_i32 = arith.constant 0 : i32
    %c0_i32_0 = arith.constant 0 : i32
    %c0_i32_1 = arith.constant 0 : i32
    %c0_i32_2 = arith.constant 0 : i32
    return %c0_i32, %c0_i32_0, %c0_i32_1 : i32, i32, i32
  }
  func.func @transform_5(%arg0: i32) -> (i32, i32) {
    %c0_i32 = arith.constant 0 : i32
    %c0_i32_0 = arith.constant 0 : i32
    %c0_i32_1 = arith.constant 0 : i32
    return %c0_i32, %c0_i32_0 : i32, i32
  }
  func.func @transform_6(%arg0: i32) -> (i32, i32) {
    %c0_i32 = arith.constant 0 : i32
    %c0_i32_0 = arith.constant 0 : i32
    %c0_i32_1 = arith.constant 0 : i32
    return %c0_i32, %c0_i32_0 : i32, i32
  }
  func.func @transform_7(%arg0: i32) -> (i32, i32, i32) {
    %c0_i32 = arith.constant 0 : i32
    %c0_i32_0 = arith.constant 0 : i32
    %c0_i32_1 = arith.constant 0 : i32
    return %arg0, %c0_i32, %c0_i32_0 : i32, i32, i32
  }
  func.func @transform_8(%arg0: i32) -> (i32, i32, i32, i32) {
    %c0_i32 = arith.constant 0 : i32
    %c0_i32_0 = arith.constant 0 : i32
    %c0_i32_1 = arith.constant 0 : i32
    %c0_i32_2 = arith.constant 0 : i32
    return %arg0, %c0_i32, %c0_i32_0, %c0_i32_1 : i32, i32, i32, i32
  }
  func.func @transform_9(%arg0: i32) -> (i32, i32, i32, i32) {
    %c0_i32 = arith.constant 0 : i32
    %c0_i32_0 = arith.constant 0 : i32
    %c0_i32_1 = arith.constant 0 : i32
    %c0_i32_2 = arith.constant 0 : i32
    return %arg0, %c0_i32, %c0_i32_0, %c0_i32_1 : i32, i32, i32, i32
  }
}

</mosaic_0001>

<bundles_post_ra>
// kernel: tpu_custom_call.1
= control target key start
LH: loop header
LB: loop body
LE: loop exit
PB: predicated region body
PF: predicated region fallthrough
CT: control target
= control target key end

     0   :  { %s2124_s0 = inlined_call_operand.vmem [shape: f32[2,8,32], index: 0, kind: input, shape index: {}]   ;;  %s2125_s1 = inlined_call_operand.hbm [shape: f32[8,32], index: 1, kind: input, shape index: {}]   ;;  %s2126_s2 = inlined_call_operand.hbm [shape: f32[8,32], index: 2, kind: input, shape index: {}]   ;;  %s2127_s3 = inlined_call_operand.vmem [shape: bf16[32,160], index: 3, kind: input, shape index: {}]   ;;  %s2128_s4 = inlined_call_operand.hbm [shape: bf16[4,8,32], index: 4, kind: input, shape index: {}]   ;;  %s2129_s5 = inlined_call_operand.hbm [shape: bf16[32,128], index: 5, kind: input, shape index: {}]   ;;  %s2130_s6 = inlined_call_operand.vmem [shape: bf16[64,32], index: 6, kind: input, shape index: {}]   ;;  %s2131_s7 = inlined_call_operand.hbm [shape: f32[2,8,32], index: 7, kind: output, shape index: {0}]   ;;  %s2132_s8 = inlined_call_operand.hbm [shape: bf16[2,4,8,8], index: 8, kind: output, shape index: {1}]   ;;  %s2133_s9 = inlined_call_operand.hbm [shape: bf16[2,4,8,8], index: 9, kind: output, shape index: {2}]  }
   0x1   :  { %2140 = sst [smem:[#allocation25_spill]] %s2125_s1 }
   0x2   :  { %2141 = sst [smem:[#allocation26_spill]] %s2126_s2 }
   0x3   :  { %15 = vsyncpa [#allocation6], 0 }
   0x4   :  { %16 = vsyncpa [#allocation9], 0 }
   0x5   :  { %17 = vsyncpa [#allocation12], 0 }
   0x6   :  { %18 = vsyncpa [#allocation7], 0 }
   0x7   :  { %20 = vsyncpa [#allocation7 + $0x1], 0 }
   0x8   :  { %21 = vsyncpa [#allocation15], 0 }
   0x9   :  { %23 = vsyncpa [#allocation15 + $0x1], 0  ;;  %s1801_s30 = smov 0   ;;  %s1803_s10 = smov 0  }
   0xa   :  { %s1805_s11 = smov 0   ;;  %s1807_s12 = smov 0  }
   0xb LB: > { %2142 = sst [smem:[#allocation22_spill]] %s1727_s11  ;;  %s1822_s13 = sadd.s32 4294967295, %s1731_s12   ;;  %s1731_s12 = sphi %s1807_s12, %s2153_s12   ;;  %s1727_s11 = sphi %s1805_s11, %s2155_s11   ;;  %s1723_s10 = sphi %s1803_s10, %s2157_s10   ;;  %s1719_s30 = sphi %s1801_s30, %s2156_s30  }
   0xc   : > { %s2134_s14 = sadd.s32 4294967294, %s1731_s12   ;;  %s1826_s15 = sadd.s32 1, %s1731_s12  }
   0xd   : > { %2143 = sst [smem:[#allocation23_spill]] %s1826_s15  ;;  %s188_s16 = sadd.s32 1, %s1727_s11 }
   0xe   : > { %s185_s17 = ssub.s32 %s1731_s12, %s1826_s15  ;;  %p198_p0 = scmp.ne.s32.totalorder %s1727_s11, %s1723_s10 }
   0xf   : > { %p186_p1 = scmp.eq.s32.totalorder %s185_s17, 0  ;;  %p199_p2 = scmp.eq.s32.totalorder %s1822_s13, 1 }
  0x10   : > { %p204_p3 = scmp.ne.s32.totalorder %s1723_s10, %s1719_s30  ;;  %p205_p4 = scmp.eq.s32.totalorder %s2134_s14, 1 }
  0x11   : > { %s1839_s18 = scalar_select %p186_p1, %s1727_s11, %s188_s16  }
  0x12   : > { %p1841_p5 = por %p199_p2, %p198_p0  ;;  %p1845_p6 = por %p205_p4, %p204_p3 }
  0x13   : > { %2144 = sst [smem:[#allocation24_spill]] %s1839_s18  ;;  %p1253_p7 = scmp.ge.s32.totalorder %s1731_s12, 1 }
  0x14   : > { %p264_p8 = scmp.lt.s32.totalorder %s1731_s12, 3  ;;  %p1392_p9 = scmp.eq.s32.totalorder %s1822_s13, 0 }
  0x15   : > { %s2148_s2 = sld [smem:[#allocation26_spill]]  ;;  %s1733_s25 = smov [#allocation8]  }
  0x16   : > { %p1852_p10 = pnand %p1253_p7, %p264_p8  ;;  %s290_s26 = sshll.u32 %s1733_s25, 4  ;;  %s291_s26 = int_to_ptr.vmem [resolvable:$true] %s290_s26 }
  0x17   : > { %s2149_s1 = sld [smem:[#allocation25_spill]]  ;;  %s302_s23 = sshll.u32 %s2128_s4, 4  ;;  %s303_s23 = int_to_ptr.hbm [resolvable:$true] %s302_s23 }
  0x18   : > { %p1369_p11 = pneg %p1852_p10  ;;  %s1734_s14 = smov [#allocation5]  }
  0x19   : > { %s278_s25 = sshll.u32 %s1734_s14, 4  ;;  %s1735_s27 = smov [#allocation10]   ;;  %s279_s25 = int_to_ptr.vmem [resolvable:$true] %s278_s25 }
  0x1a   : > { %p1866_p12 = pnand %p1392_p9, %p1369_p11  ;;  %s304_s28 = sshll.u32 %s1735_s27, 4  ;;  %s305_s28 = int_to_ptr.vmem [resolvable:$true] %s304_s28 }
  0x1b   : > { %s288_s24 = sshll.u32 %s2148_s2, 4  ;;  %s316_s18 = sshll.u32 %s2129_s5, 4  ;;  %s289_s24 = int_to_ptr.hbm [resolvable:$true] %s288_s24  ;;  %s317_s18 = int_to_ptr.hbm [resolvable:$true] %s316_s18 }
  0x1c   : > { %1375 = dma.hbm_to_vmem [thread:$0]  (!%p1866_p12), %s289_s24, 128, %s291_s26, [#allocation9]  }
  0x1d   : > { %s276_s29 = sshll.u32 %s2149_s1, 4  ;;  %s1736_s11 = smov 64   ;;  %s277_s29 = int_to_ptr.hbm [resolvable:$true] %s276_s29 }
  0x1e   : > { %1372 = dma.hbm_to_vmem [thread:$0]  (!%p1866_p12), %s277_s29, 128, %s279_s25, [#allocation6]  }
  0x1f   : > { %s1737_s15 = smov 4   ;;  %s1738_s14 = smov [#allocation11]  }
  0x20   : > { %1378 = dma.hbm_to_vmem [thread:$0]  (!%p1866_p12), %s303_s23, 256, %s305_s28, [#allocation9], %s1736_s11, %s1736_s11, %s1737_s15  }
  0x21   : > { %s318_s17 = sshll.u32 %s1738_s14, 4  ;;  %344 = sbr.rel (%p1852_p10) target bundleno = 1762 (0x6e2), region = 48  ;;  %s319_s17 = int_to_ptr.vmem [resolvable:$true] %s318_s17 }
  0x22   : > { %1381 = dma.hbm_to_vmem [thread:$0]  (!%p1866_p12), %s317_s18, 256, %s319_s17, [#allocation12], %s1736_s11, %s1736_s11, %s1737_s15  }
  0x26   : > { %1698 = dma.done.wait (%p1392_p9), [#allocation6], 128  }
  0x27   : > { %1700 = vsyncadd (%p1392_p9), [#allocation6], 4294967168 }
  0x28   : > { %1702 = dma.done.wait (%p1392_p9), [#allocation9], 384  }
  0x29   : > { %1704 = vsyncadd (%p1392_p9), [#allocation9], 4294966912 }
  0x2a   : > { %1706 = dma.done.wait (%p1392_p9), [#allocation12], 256  }
  0x2b   : > { %1708 = vsyncadd (%p1392_p9), [#allocation12], 4294967040  ;;  %p405_p13 = scmp.lt.s32.totalorder %s1822_s13, 1  ;;  %vm414_vm0 = vcmask 261120   ;;  %v1739_v3 = vmov 32.0   ;;  %v412_v21 = vld [vmem:[#allocation8] sm:$0xff] }
  0x2c   : > { %1451 = vrcp.f32 %v1739_v3  ;;  %v1278_v7 = vld [vmem:[%s2127_s3 + $0x10] sm:$0xf]  ;;  %v1338_v8 = vld [vmem:[%s2127_s3 + $0x14] sm:$0xf0]  ;;  %v1337_v9 = vld [vmem:[%s2127_s3 + $0x14] sm:$0xf] }
  0x2d   : > { %s406_s1 = scalar_select %p405_p13, %s1822_s13, 1  ;;  %v1279_v10 = vor.u32 %v1338_v8, %v1278_v7  ;;  %v1280_v11 = vld [vmem:[%s2127_s3 + $0x18] sm:$0xf0]  ;;  %v1270_v12 = vld [vmem:[%s2127_s3] sm:$0xf]  ;;  %v411_v25 = vld [vmem:[#allocation5] sm:$0xff] }
  0x2e   : > { %v1336_v13 = vld [vmem:[%s2127_s3 + $0x4] sm:$0xf0]  ;;  %v1283_v14 = vor.u32 %v1337_v9, %v1280_v11  ;;  %v1335_v15 = vld [vmem:[%s2127_s3 + $0x4] sm:$0xf]  ;;  %v1272_v16 = vld [vmem:[%s2127_s3 + $0x8] sm:$0xf0] }
  0x2f   : > { %s1267_s2 = sshll.u32 %s406_s1, 3  ;;  %472 = vmatpush.bf16.msra.mxu0 %v1279_v10  ;;  %v1271_v17 = vor.u32 %v1336_v13, %v1270_v12  ;;  %v1275_v18 = vor.u32 %v1335_v15, %v1272_v16  ;;  %s1741_s21 = smov 96   ;;  %vm520_vm5 = vcmask 60416   ;;  %vm609_vm6 = vcmask 64512  }
  0x30   : > { %s408_s18 = scalar_lea.vmem %s2124_s0, %s1267_s2  ;;  %485 = vmatpush.bf16.msra.mxu1 %v1283_v14  ;;  %s2138_s24 = smov 64   ;;  %vm737_vm7 = vcmask 1043456  }
  0x31   : > { %v1903_v0 = vld [vmem:[%s408_s18] sm:$0xff]  ;;  %s1740_s18 = smov 32   ;;  %s1943_s26 = sand.u32 1, %s1723_s10  }
  0x32   : > { %v413_v1 = vmul.f32 %v1903_v0, %v1903_v0  ;;  %v1452_v4 = vpop.eup %1451  ;;  %494 = vrot.lane.b32.xlu1 %v412_v21, %s1740_s18  ;;  %s1265_s29 = sshll.u32 %s1943_s26, 4  ;;  %s1743_s22 = smov 40  }
  0x33   : > { %v419_v5 = vmul.f32 32.0, %v1452_v4  ;;  %473 = vmatpush.bf16.msra.mxu0 %v1271_v17  ;;  %vm423_vm1 = vweird.f32 %v1452_v4  ;;  %s1952_s16 = scalar_lea.vmem [#allocation16], %s1265_s29  ;;  %s1744_s23 = smov 56   ;;  %v603_v17 = vlaneseq }
  0x34   : > { %v415_v2 = vsel %vm414_vm0, %v413_v1, 0.0  ;;  %486 = vmatpush.bf16.msra.mxu1 %v1275_v18  ;;  %s1745_s25 = smov 48   ;;  %s1746_s27 = smov 120  }
  0x35   : > { %416 = vadd.xlane.f32.xlu0 %v415_v2  ;;  %v420_v6 = vsub.f32 1.0, %v419_v5  ;;  %s1747_s28 = smov 104   ;;  %s1748_s14 = smov 112   ;;  %v604_v18 = vshrl.u32 %v603_v17, 7 }
  0x36   : > { %s1966_s17 = scalar_lea.vmem [#allocation14], %s1265_s29 }
  0x37   : > { %v421_v19 = vmul.f32 %v1452_v4, %v420_v6  ;;  %s1066_s1 = sshll.u32 %s1966_s17, 4  ;;  %s1067_s1 = int_to_ptr.vmem [resolvable:$true] %s1066_s1 }
  0x39   : > { %v422_v20 = vadd.f32 %v1452_v4, %v421_v19  ;;  %v606_v19 = vand.u32 127, %v603_v17 }
  0x3a   : > { %505 = vrot.lane.b32.xlu1 %v411_v25, %s2138_s24 }
  0x3b   : > { %v1933_v22 = vsel %vm423_vm1, %v1452_v4, %v422_v20  ;;  %vm607_vm8 = vcmp.le.s32.totalorder %v606_v19, %v604_v18  ;;  %vm1010_vm1 = vcmask 523264  }
  0x49   : > { %509 = vrot.lane.b32.xlu0 %v412_v21, %s1741_s21  ;;  %v1749_v21 = vmov -1e+09  }
  0xa4   : > { %v495_v41 = vpop.permute.xlu1 %494 }
  0xa8   : > { %v417_v23 = vpop.xlane.xlu0 %416 }
  0xa9   : > { %v425_v24 = vmul.f32 %v1933_v22, %v417_v23  ;;  %v608_v23 = vsel %vm607_vm8, 0.0, %v1749_v21 }
  0xab   : > { %v426_v26 = vadd.f32 1e-06, %v425_v24 }
  0xac   : > { %v506_v46 = vpop.permute.xlu1 %505 }
  0xad   : > { %1453 = vrsqrt.f32 %v426_v26  ;;  %vm433_vm3 = vweird.f32 %v426_v26 }
  0xb3   : > { %v1454_v27 = vpop.eup %1453 }
  0xb4   : > { %v428_v28 = vmul.f32 %v1454_v27, %v426_v26  ;;  %vm434_vm2 = vweird.f32 %v1454_v27 }
  0xb5   : > { %vm435_vm4 = vmor %vm433_vm3, %vm434_vm2 }
  0xb6   : > { %v429_v29 = vmul.f32 %v1454_v27, %v428_v28 }
  0xb8   : > { %v430_v30 = vmul.f32 0.5, %v429_v29 }
  0xba   : > { %v431_v31 = vsub.f32 1.5, %v430_v30 }
  0xbb   : > { %v510_v36 = vpop.permute.xlu0 %509 }
  0xbc   : > { %v432_v32 = vmul.f32 %v1454_v27, %v431_v31 }
  0xbe   : > { %v436_v33 = vsel %vm435_vm4, %v1454_v27, %v432_v32 }
  0xbf   : > { %v437_v34 = vmul.f32 %v436_v33, %v1903_v0 }
  0xc1   : > { %v438_v35 = vpack.c.bf16 %v437_v34, %v437_v34 }
  0xc3   : > { %1284 = vmatmul.msk.bf16.vlgmr.msra.gmra.mxu0 %vm414_vm0, %v438_v35  ;;  %1285 = vmatmul.msk.bf16.vlgmr.msra.gmra.mxu1 %vm414_vm0, %v438_v35 }
 0x140   : > { %v475_v37 = vpop.f32.mrf.mxu0  ;;  %v488_v38 = vpop.f32.mrf.mxu1 }
 0x141   : > { %v1940_v39 = vpack.c.bf16 %v488_v38, %v488_v38  ;;  %v512_v40 = vmul.f32 %v510_v36, %v475_v37  ;;  %v497_v44 = vmul.f32 %v495_v41, %v475_v37  ;;  %v508_v47 = vmul.f32 %v506_v46, %v475_v37 }
 0x142   : > { %v492_v51 = vmul.f32 %v475_v37, %v411_v25 }
 0x143   : > { %527 = vst.msk [vmem:[#allocation4] sm:$0xf] %vm520_vm5, %v1940_v39  ;;  %514 = vrot.lane.b32.xlu2 %v512_v40, %s1741_s21 }
 0x148   : > { %v477_v42 = vpop.f32.mrf.mxu0  ;;  %v490_v43 = vpop.f32.mrf.mxu1 }
 0x14a   : > { %v583_v45 = vld [vmem:[#allocation4] sm:$0xf] }
 0x14b   : > { %499 = vrot.lane.b32.xlu2 %v497_v44, %s1741_s21  ;;  %587 = vst.msk [vmem:[%s1952_s16] sm:$0xf] %vm520_vm5, %v583_v45  ;;  %v599_v4 = vld [vmem:[#allocation4] sm:$0xf] }
 0x14c   : > { %v739_v11 = vsel %vm737_vm7, %v599_v4, 0 }
 0x19d   : > { %v515_v48 = vpop.permute.xlu2 %514 }
 0x19e   : > { %v517_v49 = vadd.f32 %v515_v48, %v508_v47 }
 0x1a0   : > { %v518_v50 = vpack.c.bf16 %v517_v49, %v517_v49 }
 0x1a2   : > { %565 = vrot.lane.b32.xlu0 %v518_v50, %s1743_s22  ;;  %534 = vrot.lane.b32.xlu2 %v518_v50, %s1744_s23  ;;  %s1345_s23 = sshll.u32 %s1822_s13, 4 }
 0x1a3   : > { %523 = vrot.lane.b32.xlu1 %v518_v50, %s2138_s24  ;;  %s1082_s18 = scalar_lea.hbm %s2133_s9, %s1345_s23 }
 0x1a5   : > { %v500_v52 = vpop.permute.xlu2 %499 }
 0x1a6   : > { %v502_v53 = vadd.f32 %v500_v52, %v492_v51 }
 0x1a8   : > { %v503_v54 = vpack.c.bf16 %v502_v53, %v502_v53 }
 0x1aa   : > { %521 = vst.msk [vmem:[#allocation2] sm:$0xf] %vm520_vm5, %v503_v54  ;;  %550 = vrot.lane.b32.xlu2 %v518_v50, %s1745_s25 }
 0x1ab   : > { %529 = vrot.lane.b32.xlu1 %v503_v54, %s1746_s27 }
 0x1b1   : > { %v591_v14 = vld [vmem:[#allocation2] sm:$0xf] }
 0x1b2   : > { %560 = vrot.lane.b32.xlu2 %v503_v54, %s1747_s28 }
 0x1b3   : > { %545 = vrot.lane.b32.xlu1 %v503_v54, %s1748_s14 }
 0x1fc   : > { %v535_v55 = vpop.permute.xlu2 %534 }
 0x1fd   : > { %538 = vst.msk [vmem:[#allocation3 + $0x4] sm:$0xf] %vm520_vm5, %v535_v55 }
 0x204   : > { %v551_v56 = vpop.permute.xlu2 %550  ;;  %v596_v57 = vld [vmem:[#allocation3 + $0x4] sm:$0xf] }
 0x205   : > { %v576_v58 = vld [vmem:[#allocation3 + $0x4] sm:$0xf]  ;;  %554 = vst.msk [vmem:[#allocation3 + $0x8] sm:$0xf] %vm520_vm5, %v551_v56  ;;  %v633_v59 = vsel %vm609_vm6, %v596_v57, 0 }
 0x206   : > { %642 = vmatpush.bf16.xpose.msra.mxu3 %v633_v59  ;;  %580 = vst.msk [vmem:[%s1966_s17 + $0x4] sm:$0xf] %vm520_vm5, %v576_v58 }
 0x20c   : > { %v561_v60 = vpop.permute.xlu2 %560  ;;  %v597_v61 = vld [vmem:[#allocation3 + $0x8] sm:$0xf] }
 0x20d   : > { %v577_v62 = vld [vmem:[#allocation3 + $0x8] sm:$0xf]  ;;  %564 = vst.msk [vmem:[#allocation2 + $0xc] sm:$0xf] %vm520_vm5, %v561_v60  ;;  %v652_v63 = vsel %vm609_vm6, %v597_v61, 0 }
 0x20e   : > { %661 = vmatpush.bf16.xpose.msrb.mxu0 %v652_v63  ;;  %581 = vst.msk [vmem:[%s1966_s17 + $0x8] sm:$0xf] %vm520_vm5, %v577_v62 }
 0x214   : > { %v566_v1 = vpop.permute.xlu0 %565  ;;  %v594_v12 = vld [vmem:[#allocation2 + $0xc] sm:$0xf] }
 0x215   : > { %569 = vst.msk [vmem:[#allocation3 + $0xc] sm:$0xf] %vm520_vm5, %v566_v1  ;;  %v524_v2 = vpop.permute.xlu1 %523 }
 0x216   : > { %526 = vst.msk [vmem:[#allocation3] sm:$0xf] %vm520_vm5, %v524_v2 }
 0x21c   : > { %v598_v3 = vld [vmem:[#allocation3 + $0xc] sm:$0xf] }
 0x21d   : > { %v578_v5 = vld [vmem:[#allocation3 + $0xc] sm:$0xf]  ;;  %v530_v6 = vpop.permute.xlu1 %529  ;;  %v595_v7 = vld [vmem:[#allocation3] sm:$0xf]  ;;  %v671_v8 = vsel %vm609_vm6, %v598_v3, 0 }
 0x21e   : > { %v575_v9 = vld [vmem:[#allocation3] sm:$0xf]  ;;  %533 = vst.msk [vmem:[#allocation2 + $0x4] sm:$0xf] %vm520_vm5, %v530_v6  ;;  %v614_v10 = vsel %vm609_vm6, %v595_v7, 0  ;;  %680 = vmatpush.bf16.xpose.msrb.mxu1 %v671_v8 }
 0x21f   : > { %623 = vmatpush.bf16.xpose.msra.mxu2 %v614_v10  ;;  %579 = vst.msk [vmem:[%s1966_s17] sm:$0xf] %vm520_vm5, %v575_v9 }
 0x220   : > { %582 = vst.msk [vmem:[%s1966_s17 + $0xc] sm:$0xf] %vm520_vm5, %v578_v5  ;;  %s1617_s17 = scalar_lea.hbm %s2132_s8, 32 }
 0x225   : > { %v546_v13 = vpop.permute.xlu1 %545  ;;  %v592_v15 = vld [vmem:[#allocation2 + $0x4] sm:$0xf]  ;;  %1289 = vmatmul.msk.bf16.vlgmr.msrb.gmra.mxu1 %vm609_vm6, %v594_v12 }
 0x226   : > { %549 = vst.msk [vmem:[#allocation2 + $0x8] sm:$0xf] %vm520_vm5, %v546_v13  ;;  %1286 = vmatmul.msk.bf16.vlgmr.msra.gmra.mxu2 %vm609_vm6, %v591_v14  ;;  %1287 = vmatmul.msk.bf16.vlgmr.msra.gmra.mxu3 %vm609_vm6, %v592_v15 }
 0x227   : > { %748 = vmatpush.bf16.msrb.mxu2 %v739_v11 }
 0x22d   : > { %v593_v16 = vld [vmem:[#allocation2 + $0x8] sm:$0xf] }
 0x22e   : > { %1288 = vmatmul.msk.bf16.vlgmr.msrb.gmra.mxu0 %vm609_vm6, %v593_v16 }
 0x2a2   : > { %v682_v20 = vpop.f32.mrf.mxu1 }
 0x2a3   : > { %v683_v34 = vadd.f32 %v682_v20, %v608_v23 }
 0x2a5   : > { %v695_v38 = vsel %vm609_vm6, %v683_v34, -inf }
 0x2a9   : > { %v625_v24 = vpop.f32.mrf.mxu2  ;;  %v644_v25 = vpop.f32.mrf.mxu3 }
 0x2aa   : > { %v626_v26 = vadd.f32 %v625_v24, %v608_v23  ;;  %v645_v27 = vadd.f32 %v644_v25, %v608_v23  ;;  %v684_v28 = vpop.f32.mrf.mxu1  ;;  %v815_v25 = vld [vmem:[#allocation10] sm:$0xf] }
 0x2ab   : > { %v663_v29 = vpop.f32.mrf.mxu0 }
 0x2ac   : > { %v664_v30 = vadd.f32 %v663_v29, %v608_v23  ;;  %v686_v31 = vsel %vm609_vm6, %v626_v26, -inf  ;;  %v689_v32 = vsel %vm609_vm6, %v645_v27, -inf  ;;  %v837_v29 = vld [vmem:[#allocation10 + $0x4] sm:$0xf] }
 0x2ad   : > { %687 = vmax.xlane.f32.xlu0 %v686_v31  ;;  %690 = vmax.xlane.f32.xlu1 %v689_v32  ;;  %v881_v31 = vld [vmem:[#allocation10 + $0xc] sm:$0xf] }
 0x2ae   : > { %v692_v33 = vsel %vm609_vm6, %v664_v30, -inf  ;;  %v886_v32 = vsel %vm737_vm7, %v881_v31, 0 }
 0x2af   : > { %693 = vmax.xlane.f32.xlu2 %v692_v33 }
 0x2b1   : > { %v627_v35 = vpop.f32.mrf.mxu2  ;;  %v646_v36 = vpop.f32.mrf.mxu3 }
 0x2b3   : > { %v665_v37 = vpop.f32.mrf.mxu0 }
 0x2b5   : > { %696 = vmax.xlane.f32.xlu0 %v695_v38 }
 0x2c6   : > { %540 = vrot.lane.b32.xlu1 %v1940_v39, %s1746_s27 }
 0x320   : > { %v688_v40 = vpop.xlane.xlu0 %687  ;;  %v691_v42 = vpop.xlane.xlu1 %690 }
 0x321   : > { %v698_v41 = vsub.f32 %v626_v26, %v688_v40  ;;  %v699_v46 = vsub.f32 %v645_v27, %v691_v42  ;;  %v820_v26 = vsel %vm737_vm7, %v815_v25, 0  ;;  %v859_v27 = vld [vmem:[#allocation10 + $0x8] sm:$0xf] }
 0x322   : > { %v694_v43 = vpop.xlane.xlu2 %693  ;;  %829 = vmatpush.bf16.msra.mxu2 %v820_v26  ;;  %v864_v28 = vsel %vm737_vm7, %v859_v27, 0 }
 0x323   : > { %v702_v44 = vmul.f32 1.442695, %v698_v41  ;;  %v700_v45 = vsub.f32 %v664_v30, %v694_v43  ;;  %v704_v48 = vmul.f32 1.442695, %v699_v46  ;;  %v842_v30 = vsel %vm737_vm7, %v837_v29, 0 }
 0x325   : > { %1455 = vpow2.f32 %v702_v44  ;;  %v706_v47 = vmul.f32 1.442695, %v700_v45 }
 0x327   : > { %1457 = vpow2.f32 %v706_v47 }
 0x328   : > { %v697_v49 = vpop.xlane.xlu0 %696  ;;  %1459 = vpow2.f32 %v704_v48 }
 0x329   : > { %v701_v50 = vsub.f32 %v683_v34, %v697_v49 }
 0x32b   : > { %v1456_v51 = vpop.eup %1455  ;;  %v708_v52 = vmul.f32 1.442695, %v701_v50 }
 0x32c   : > { %v710_v53 = vsel %vm609_vm6, %v1456_v51, 0.0 }
 0x32d   : > { %v1458_v54 = vpop.eup %1457  ;;  %1461 = vpow2.f32 %v708_v52  ;;  %711 = vadd.xlane.f32.xlu2 %v710_v53 }
 0x32e   : > { %v716_v55 = vsel %vm609_vm6, %v1458_v54, 0.0  ;;  %v1460_v56 = vpop.eup %1459 }
 0x32f   : > { %717 = vadd.xlane.f32.xlu0 %v716_v55  ;;  %v713_v59 = vsel %vm609_vm6, %v1460_v56, 0.0 }
 0x333   : > { %v1462_v57 = vpop.eup %1461 }
 0x334   : > { %v719_v58 = vsel %vm609_vm6, %v1462_v57, 0.0 }
 0x335   : > { %720 = vadd.xlane.f32.xlu1 %v719_v58 }
 0x337   : > { %714 = vadd.xlane.f32.xlu0 %v713_v59 }
 0x338   : > { %v541_v60 = vpop.permute.xlu1 %540 }
 0x339   : > { %544 = vst.msk [vmem:[#allocation4 + $0x4] sm:$0xf] %vm520_vm5, %v541_v60  ;;  %v1340_v60 = vld [vmem:[#allocation11 + $0x8] sm:$0xff] }
 0x340   : > { %v600_v61 = vld [vmem:[#allocation4 + $0x4] sm:$0xf] }
 0x341   : > { %v584_v62 = vld [vmem:[#allocation4 + $0x4] sm:$0xf]  ;;  %v758_v63 = vsel %vm737_vm7, %v600_v61, 0  ;;  %v1339_v61 = vld [vmem:[#allocation11] sm:$0xff] }
 0x342   : > { %588 = vst.msk [vmem:[%s1952_s16 + $0x4] sm:$0xf] %vm520_vm5, %v584_v62  ;;  %767 = vmatpush.bf16.msrb.mxu3 %v758_v63 }
 0x345   : > { %555 = vrot.lane.b32.xlu2 %v1940_v39, %s1748_s14  ;;  %s1034_s14 = sand.u32 1, %s1822_s13  }
 0x346   : > { %851 = vmatpush.bf16.msra.mxu3 %v842_v30  ;;  %s2058_s21 = scalar_lea.sflag [#allocation15], %s1034_s14 }
 0x34b   : > { %570 = vrot.lane.b32.xlu0 %v1940_v39, %s1747_s28  ;;  %s1065_s28 = scalar_lea.hbm %s2132_s8, %s1345_s23 }
 0x34c   : > { %s1068_s2 = sshll.u32 %s1065_s28, 4  ;;  %s1069_s2 = int_to_ptr.hbm [resolvable:$true] %s1068_s2 }
 0x34d   : > { %s1611_s29 = sshra.s32 %s1069_s2, 4  ;;  %s1612_s29 = int_to_ptr.hbm [resolvable:$true] %s1611_s29 }
 0x34e   : > { %s1613_s22 = scalar_lea.hbm %s1612_s29, 16  ;;  %p1618_p3 = scmp.lt.s32.totalorder %s1612_s29, %s2132_s8 }
 0x34f   : > { %p1614_p0 = scmp.ne.s32.totalorder %s1612_s29, %s1613_s22  ;;  %p1619_p4 = scmp.lt.s32.totalorder %s1617_s17, %s1613_s22 }
 0x351   : > { %p1615_p1 = pnand %p1614_p0, %p1841_p5  ;;  %p1620_p7 = por %p1619_p4, %p1618_p3 }
 0x353   : > { %p1616_p2 = pneg %p1615_p1 }
 0x355   : > { %p1621_p8 = pnand %p1620_p7, %p1616_p2 }
 0x3a0   : > { %v712_v1 = vpop.xlane.xlu2 %711 }
 0x3a1   : > { %1463 = vrcp.f32 %v712_v1 }
 0x3a2   : > { %v718_v2 = vpop.xlane.xlu0 %717 }
 0x3a3   : > { %1465 = vrcp.f32 %v718_v2 }
 0x3a7   : > { %v1464_v3 = vpop.eup %1463 }
 0x3a8   : > { %v726_v4 = vmul.f32 %v1464_v3, %v1456_v51  ;;  %v556_v5 = vpop.permute.xlu2 %555  ;;  %v721_v16 = vpop.xlane.xlu1 %720 }
 0x3a9   : > { %559 = vst.msk [vmem:[#allocation4 + $0x8] sm:$0xf] %vm520_vm5, %v556_v5  ;;  %v1466_v8 = vpop.eup %1465 }
 0x3aa   : > { %v715_v6 = vpop.xlane.xlu0 %714  ;;  %v730_v7 = vpack.c.bf16 %v726_v4, %v726_v4  ;;  %v728_v9 = vmul.f32 %v1466_v8, %v1458_v54 }
 0x3ab   : > { %1467 = vrcp.f32 %v715_v6 }
 0x3ac   : > { %1290 = vmatmul.msk.bf16.vlgmr.msrb.gmra.mxu2 %vm609_vm6, %v730_v7  ;;  %v732_v14 = vpack.c.bf16 %v728_v9, %v728_v9  ;;  %1469 = vrcp.f32 %v721_v16  ;;  %v1341_v16 = vld [vmem:[%s2130_s6] sm:$0xff] }
 0x3ad   : > { %945 = vmatpush.bf16.msrb.mxu2 %v1340_v60 }
 0x3b0   : > { %v601_v10 = vld [vmem:[#allocation4 + $0x8] sm:$0xf] }
 0x3b1   : > { %v585_v11 = vld [vmem:[#allocation4 + $0x8] sm:$0xf]  ;;  %v1468_v39 = vpop.eup %1467  ;;  %v777_v12 = vsel %vm737_vm7, %v601_v10, 0  ;;  %946 = vmatpush.bf16.msrb.mxu2 %v1339_v61  ;;  %v1343_v10 = vld [vmem:[%s2130_s6 + $0x10] sm:$0xff] }
 0x3b2   : > { %589 = vst.msk [vmem:[%s1952_s16 + $0x8] sm:$0xf] %vm520_vm5, %v585_v11  ;;  %v727_v13 = vmul.f32 %v1468_v39, %v1460_v56  ;;  %786 = vmatpush.bf16.msra.mxu0 %v777_v12  ;;  %v1470_v18 = vpop.eup %1469  ;;  %v1342_v11 = vld [vmem:[%s2130_s6 + $0x8] sm:$0xff] }
 0x3b3   : > { %v729_v19 = vmul.f32 %v1470_v18, %v1462_v57 }
 0x3b4   : > { %v731_v15 = vpack.c.bf16 %v727_v13, %v727_v13 }
 0x3b5   : > { %1292 = vmatmul.msk.bf16.vlgmr.msra.gmra.mxu0 %vm609_vm6, %v732_v14  ;;  %v733_v24 = vpack.c.bf16 %v729_v19, %v729_v19 }
 0x3b6   : > { %1291 = vmatmul.msk.bf16.vlgmr.msrb.gmra.mxu3 %vm609_vm6, %v731_v15  ;;  %873 = vmatpush.bf16.msrb.mxu0 %v864_v28 }
 0x3bd   : > { %v571_v17 = vpop.permute.xlu0 %570 }
 0x3be   : > { %574 = vst.msk [vmem:[#allocation4 + $0xc] sm:$0xf] %vm520_vm5, %v571_v17 }
 0x3c5   : > { %v602_v20 = vld [vmem:[#allocation4 + $0xc] sm:$0xf] }
 0x3c6   : > { %v586_v21 = vld [vmem:[#allocation4 + $0xc] sm:$0xf]  ;;  %v796_v23 = vsel %vm737_vm7, %v602_v20, 0 }
 0x3c7   : > { %590 = vst.msk [vmem:[%s1952_s16 + $0xc] sm:$0xf] %vm520_vm5, %v586_v21  ;;  %805 = vmatpush.bf16.msra.mxu1 %v796_v23 }
 0x3ca   : > { %1293 = vmatmul.msk.bf16.vlgmr.msra.gmra.mxu1 %vm609_vm6, %v733_v24 }
 0x3cb   : > { %895 = vmatpush.bf16.msrb.mxu1 %v886_v32 }
 0x42f   : > { %v750_v33 = vpop.f32.mrf.mxu2 }
 0x430   : > { %v811_v34 = vpack.c.bf16 %v750_v33, %v750_v33 }
 0x432   : > { %v788_v35 = vpop.f32.mrf.mxu0  ;;  %1294 = vmatmul.msk.bf16.vlgmr.msra.gmra.mxu2 %vm609_vm6, %v811_v34 }
 0x433   : > { %v813_v36 = vpack.c.bf16 %v788_v35, %v788_v35 }
 0x435   : > { %1296 = vmatmul.msk.bf16.vlgmr.msrb.gmra.mxu0 %vm609_vm6, %v813_v36 }
 0x437   : > { %v752_v37 = vpop.f32.mrf.mxu2 }
 0x439   : > { %v769_v38 = vpop.f32.mrf.mxu3 }
 0x43a   : > { %v812_v40 = vpack.c.bf16 %v769_v38, %v769_v38  ;;  %v790_v41 = vpop.f32.mrf.mxu0 }
 0x43c   : > { %1295 = vmatmul.msk.bf16.vlgmr.msra.gmra.mxu3 %vm609_vm6, %v812_v40 }
 0x441   : > { %v771_v42 = vpop.f32.mrf.mxu3 }
 0x447   : > { %v807_v43 = vpop.f32.mrf.mxu1 }
 0x448   : > { %v814_v44 = vpack.c.bf16 %v807_v43, %v807_v43 }
 0x44a   : > { %1297 = vmatmul.msk.bf16.vlgmr.msrb.gmra.mxu1 %vm609_vm6, %v814_v44 }
 0x44f   : > { %v809_v45 = vpop.f32.mrf.mxu1 }
 0x4b2   : > { %v875_v46 = vpop.f32.mrf.mxu0 }
 0x4b5   : > { %v831_v47 = vpop.f32.mrf.mxu2 }
 0x4b6   : > { %v835_v51 = vadd.f32 %v831_v47, %v1903_v0 }
 0x4ba   : > { %v877_v48 = vpop.f32.mrf.mxu0 }
 0x4bd   : > { %v833_v49 = vpop.f32.mrf.mxu2 }
 0x4bf   : > { %v853_v50 = vpop.f32.mrf.mxu3 }
 0x4c0   : > { %v857_v52 = vadd.f32 %v853_v50, %v835_v51 }
 0x4c2   : > { %v879_v53 = vadd.f32 %v875_v46, %v857_v52 }
 0x4c7   : > { %v855_v54 = vpop.f32.mrf.mxu3  ;;  %v897_v55 = vpop.f32.mrf.mxu1 }
 0x4c8   : > { %v2028_v56 = vadd.f32 %v897_v55, %v879_v53 }
 0x4ca   : > { %v902_v57 = vmul.f32 %v2028_v56, %v2028_v56 }
 0x4cc   : > { %v903_v58 = vsel %vm414_vm0, %v902_v57, 0.0 }
 0x4cd   : > { %904 = vadd.xlane.f32.xlu2 %v903_v58 }
 0x4cf   : > { %v899_v59 = vpop.f32.mrf.mxu1 }
 0x540   : > { %v905_v62 = vpop.xlane.xlu2 %904 }
 0x541   : > { %v906_v0 = vmul.f32 %v905_v62, %v1933_v22  ;;  %v1344_v22 = vld [vmem:[%s2130_s6 + $0x18] sm:$0xff] }
 0x542   : > { %1018 = vmatpush.bf16.msrb.mxu3 %v1344_v22 }
 0x543   : > { %v907_v63 = vadd.f32 1e-06, %v906_v0 }
 0x545   : > { %1471 = vrsqrt.f32 %v907_v63  ;;  %vm914_vm10 = vweird.f32 %v907_v63 }
 0x546   : > { %1019 = vmatpush.bf16.msrb.mxu3 %v1343_v10 }
 0x54a   : > { %1020 = vmatpush.bf16.msrb.mxu3 %v1342_v11 }
 0x54b   : > { %v1472_v1 = vpop.eup %1471 }
 0x54c   : > { %v909_v2 = vmul.f32 %v1472_v1, %v907_v63  ;;  %vm915_vm9 = vweird.f32 %v1472_v1 }
 0x54d   : > { %vm916_vm11 = vmor %vm914_vm10, %vm915_vm9 }
 0x54e   : > { %v910_v3 = vmul.f32 %v1472_v1, %v909_v2  ;;  %1021 = vmatpush.bf16.msrb.mxu3 %v1341_v16 }
 0x550   : > { %v911_v4 = vmul.f32 0.5, %v910_v3 }
 0x552   : > { %v912_v5 = vsub.f32 1.5, %v911_v4 }
 0x554   : > { %v913_v6 = vmul.f32 %v1472_v1, %v912_v5 }
 0x556   : > { %v917_v7 = vsel %vm916_vm11, %v1472_v1, %v913_v6 }
 0x557   : > { %v918_v8 = vmul.f32 %v917_v7, %v2028_v56 }
 0x559   : > { %v919_v9 = vpack.c.bf16 %v918_v8, %v918_v8 }
 0x55b   : > { %1306 = vmatmul.msk.bf16.vlgmr.msrb.gmra.mxu2 %vm414_vm0, %v919_v9 }
 0x5de   : > { %v948_v39 = vpop.f32.mrf.mxu2 }
 0x5df   : > { %973 = vrot.lane.b32.xlu0 %v948_v39, %s2138_s24  ;;  %v1307_v13 = vmul.f32 -1.442695, %v948_v39 }
 0x5e1   : > { %1473 = vpow2.f32 %v1307_v13 }
 0x5e6   : > { %v950_v12 = vpop.f32.mrf.mxu2 }
 0x5e7   : > { %v1474_v14 = vpop.eup %1473 }
 0x5e8   : > { %v955_v15 = vadd.f32 1.0, %v1474_v14 }
 0x5ea   : > { %1475 = vrcp.f32 %v955_v15  ;;  %v967_v23 = vand.u32 2147483648, %v955_v15  ;;  %vm961_vm13 = vweird.f32 %v955_v15  ;;  %v965_v24 = vand.u32 2147483647, %v955_v15 }
 0x5ec   : > { %v968_v26 = vor.u32 1.1754944e-38, %v967_v23  ;;  %vm966_vm15 = vcmp.eq.f32.partialorder %v965_v24, 8.507059e+37 }
 0x5f0   : > { %v1476_v17 = vpop.eup %1475 }
 0x5f1   : > { %v957_v18 = vmul.f32 %v1476_v17, %v955_v15  ;;  %vm962_vm12 = vweird.f32 %v1476_v17 }
 0x5f2   : > { %vm963_vm14 = vmor %vm961_vm13, %vm962_vm12 }
 0x5f3   : > { %v958_v19 = vsub.f32 1.0, %v957_v18 }
 0x5f5   : > { %v959_v20 = vmul.f32 %v1476_v17, %v958_v19 }
 0x5f7   : > { %v960_v21 = vadd.f32 %v1476_v17, %v959_v20 }
 0x5f9   : > { %v964_v25 = vsel %vm963_vm14, %v1476_v17, %v960_v21 }
 0x5fa   : > { %v969_v27 = vsel %vm966_vm15, %v968_v26, %v964_v25 }
 0x5fb   : > { %v971_v28 = vmul.f32 %v969_v27, %v948_v39 }
 0x651   : > { %v974_v29 = vpop.permute.xlu0 %973 }
 0x652   : > { %v976_v30 = vmul.f32 %v974_v29, %v971_v28 }
 0x654   : > { %v977_v31 = vpack.c.bf16 %v976_v30, %v976_v30 }
 0x656   : > { %1324 = vmatmul.msk.bf16.vlgmr.msrb.gmra.mxu3 %vm1010_vm1, %v977_v31 }
 0x657   : > { %1624 = shalt.err (!%p1621_p8)
}
 0x658   : > { %s1750_s23 = smov 4   ;;  %s2151_s14 = smov 64  }
 0x659   : > { %1364 = dma.vmem_to_hbm [thread:$0]  (%p1841_p5), %s1067_s1, 256, %s1069_s2, %s2058_s21, %s2151_s14, %s2151_s14, %s1750_s23  }
 0x65a   : > { %s1085_s11 = sshll.u32 %s1082_s18, 4  ;;  %s1083_s15 = sshll.u32 %s1952_s16, 4  ;;  %s1086_s11 = int_to_ptr.hbm [resolvable:$true] %s1085_s11  ;;  %s1084_s15 = int_to_ptr.vmem [resolvable:$true] %s1083_s15 }
 0x65b   : > { %s1639_s25 = sshra.s32 %s1086_s11, 4  ;;  %s1645_s27 = scalar_lea.hbm %s2133_s9, 32  ;;  %s1640_s25 = int_to_ptr.hbm [resolvable:$true] %s1639_s25 }
 0x65c   : > { %s1641_s24 = scalar_lea.hbm %s1640_s25, 16  ;;  %p1646_p12 = scmp.lt.s32.totalorder %s1640_s25, %s2133_s9 }
 0x65d   : > { %p1642_p9 = scmp.ne.s32.totalorder %s1640_s25, %s1641_s24  ;;  %p1647_p13 = scmp.lt.s32.totalorder %s1645_s27, %s1641_s24 }
 0x65f   : > { %p1643_p10 = pnand %p1642_p9, %p1841_p5  ;;  %p1648_p0 = por %p1647_p13, %p1646_p12 }
 0x661   : > { %p1644_p11 = pneg %p1643_p10 }
 0x663   : > { %p1649_p1 = pnand %p1648_p0, %p1644_p11 }
 0x665   : > { %1652 = shalt.err (!%p1649_p1)
}
 0x666   : > { %1365 = dma.vmem_to_hbm [thread:$0]  (%p1841_p5), %s1084_s15, 256, %s1086_s11, %s2058_s21, %s2151_s14, %s2151_s14, %s1750_s23  }
 0x667   : > { %s1328_s16 = sshll.u32 %s1822_s13, 3  ;;  %s1264_s1 = sshll.u32 %s1943_s26, 3 }
 0x668   : > { %s1050_s25 = scalar_lea.hbm %s2131_s7, %s1328_s16  ;;  %s390_s24 = scalar_lea.vmem [#allocation13], %s1264_s1 }
 0x669   : > { %s1052_s29 = sshll.u32 %s390_s24, 4  ;;  %s1054_s22 = sshll.u32 %s1050_s25, 4  ;;  %s1053_s29 = int_to_ptr.vmem [resolvable:$true] %s1052_s29  ;;  %s1055_s22 = int_to_ptr.hbm [resolvable:$true] %s1054_s22 }
 0x66a   : > { %s1030_s27 = scalar_lea.sflag [#allocation7], %s1943_s26  ;;  %s1667_s17 = sshra.s32 %s1055_s22, 4  ;;  %s1668_s17 = int_to_ptr.hbm [resolvable:$true] %s1667_s17 }
 0x66b   : > { %s1669_s13 = scalar_lea.hbm %s1668_s17, 8  ;;  %s1673_s14 = scalar_lea.hbm %s2131_s7, 16 }
 0x66c   : > { %p1670_p2 = scmp.ne.s32.totalorder %s1668_s17, %s1669_s13  ;;  %p1674_p7 = scmp.lt.s32.totalorder %s1668_s17, %s2131_s7 }
 0x66d   : > { %p1675_p8 = scmp.lt.s32.totalorder %s1673_s14, %s1669_s13 }
 0x66e   : > { %p1671_p3 = pnand %p1670_p2, %p1841_p5 }
 0x66f   : > { %p1676_p9 = por %p1675_p8, %p1674_p7 }
 0x670   : > { %p1672_p4 = pneg %p1671_p3 }
 0x672   : > { %p1677_p10 = pnand %p1676_p9, %p1672_p4 }
 0x6d9   : > { %v1023_v32 = vpop.f32.mrf.mxu3 }
 0x6da   : > { %v1027_v33 = vadd.f32 %v1023_v32, %v2028_v56 }
 0x6dc   : > { %1028 = vst.msk [vmem:[%s390_s24] sm:$0xff] %vm414_vm0, %v1027_v33 }
 0x6dd   : > { %1680 = shalt.err (!%p1677_p10)
}
 0x6de   : > { %1363 = dma.vmem_to_hbm [thread:$0]  (%p1841_p5), %s1053_s29, 128, %s1055_s22, %s1030_s27  }
 0x6e1   : > { %v1025_v34 = vpop.f32.mrf.mxu3 }
 0x6e2 PF: > { %p1400_p11 = scmp.ge.s32.totalorder %s1731_s12, 2  ;;  %s1100_s26 = sand.u32 1, %s1719_s30  }
 0x6e3   : > { %s1101_s28 = scalar_lea.sflag [#allocation7], %s1100_s26 }
 0x6e4   : > { %p1383_p12 = pnand %p1400_p11, %p1845_p6 }
 0x6e6   : > { %p1384_p13 = pneg %p1383_p12 }
 0x6e8   : > { %1710 = dma.done.wait (%p1384_p13), %s1101_s28, 128  }
 0x6e9   : > { %1712 = vsyncadd (%p1384_p13), %s1101_s28, 4294967168  ;;  %s2152_s16 = sadd.s32 4294967294, %s1731_s12  }
 0x6ea   : > { %s1110_s1 = sand.u32 1, %s2152_s16  }
 0x6eb   : > { %s1111_s2 = scalar_lea.sflag [#allocation15], %s1110_s1 }
 0x6ec   : > { %1714 = dma.done.wait (%p1384_p13), %s1111_s2, 512  }
 0x6ed   : > { %1716 = vsyncadd (%p1384_p13), %s1111_s2, 4294966784  ;;  %s2153_s12 = sld [smem:[#allocation23_spill]]  ;;  %s2156_s30 = smov %s1723_s10 }
 0x6ee   : > { %s2154_s19 = sld [smem:[#allocation22_spill]] }
 0x6ef   : > { %s2155_s11 = sld [smem:[#allocation24_spill]] }
 0x6f3   : > { %p26_p5 = scmp.ge.s32.totalorder %s2153_s12, 4  }
 0x6f4   : > { %s2157_s10 = smov %s2154_s19 }
 0x6f5   :  { %28 = sbr.rel (!%p26_p5) target bundleno = 11 (0xb), region = 144 }
 0x6fa   :  { %1127 = vsyncpa [#allocation6], 1 }
 0x6fb   :  { %1129 = vsyncpa [#allocation6 + $0x1], 1 }
 0x6fc   :  { %1130 = vsyncpa [#allocation9], 1 }
 0x6fd   :  { %1131 = vsyncpa [#allocation12], 1 }
 0x6fe   :  { %1132 = vsyncpa [#allocation7], 1 }
 0x6ff   :  { %1134 = vsyncpa [#allocation7 + $0x1], 1 }
 0x700   :  { %1135 = vsyncpa [#allocation15], 1 }
 0x701   :  { %1137 = vsyncpa [#allocation15 + $0x1], 1 }

</bundles_post_ra>
